<compile_context>
chip_gen: v5e
topology: v5e:2x2
jax: 0.10.0
libtpu: 0.0.40
codegen_flags: <defaults>
</compile_context>

<pallas_src>
import jax
import jax.numpy as jnp
from jax import lax
from jax.experimental import pallas as pl
from jax.experimental.pallas import tpu as pltpu


# ----------------------------------------------------------------------------
# Fused encoder kernel factory
# ----------------------------------------------------------------------------
def _make_encoder_kernel(S, B, E, H, num_layers):
    SB = S * B

    def kernel(ids_ref, table_ref, *rest):
        # rest = [w_ih_t, w_hh_t, bias] * num_layers, hidden_ref, cell_ref, emb_ref, hseq_ref
        w_refs = rest[:3 * num_layers]
        hidden_ref = rest[3 * num_layers]
        cell_ref = rest[3 * num_layers + 1]
        emb_ref = rest[3 * num_layers + 2]      # (S*B, E) VMEM scratch
        hseq_ref = rest[3 * num_layers + 3]     # (S*B, H) VMEM scratch (inter-layer seq)

        # ---- Embedding lookup: ids live in SMEM (scalar prefetch); table rows
        #      are copied directly out of the VMEM-resident table (leading-dim
        #      dynamic index -> cheap address math, no one-hot matmul). --------
        for n in range(SB):
            tok = ids_ref[n]                            # SMEM scalar read
            emb_ref[pl.ds(n, 1), :] = table_ref[tok]    # (1, E) row copy
        # dropout_layer: identity in eval mode.

        x_in = emb_ref[...]                             # (S*B, E_in)

        for l in range(num_layers):
            w_ih = w_refs[3 * l][...]                   # (E_in, 4H)
            w_hh = w_refs[3 * l + 1][...]               # (H, 4H)
            bias = w_refs[3 * l + 2][...]               # (1, 4H)

            # Hoisted input projection + bias: one big MXU matmul, outside the
            # serial recurrence.
            xproj = jnp.dot(x_in, w_ih,
                            preferred_element_type=jnp.float32) + bias  # (S*B, 4H)

            h = jnp.zeros((B, H), jnp.float32)
            c = jnp.zeros((B, H), jnp.float32)
            for t in range(S):                          # fully unrolled, static
                gates = xproj[t * B:(t + 1) * B, :] + jnp.dot(
                    h, w_hh, preferred_element_type=jnp.float32)        # (B, 4H)
                i_g = jax.nn.sigmoid(gates[:, 0 * H:1 * H])
                f_g = jax.nn.sigmoid(gates[:, 1 * H:2 * H])
                g_g = jnp.tanh(gates[:, 2 * H:3 * H])
                o_g = jax.nn.sigmoid(gates[:, 3 * H:4 * H])
                c = f_g * c + i_g * g_g
                h = o_g * jnp.tanh(c)
                if l < num_layers - 1:
                    # Output sequence only needed as next layer's input.
                    hseq_ref[pl.ds(t * B, B), :] = h
            hidden_ref[l] = h
            cell_ref[l] = c
            if l < num_layers - 1:
                x_in = hseq_ref[...]                    # inter-layer dropout: identity (eval)

    return kernel


# ----------------------------------------------------------------------------
# Encoder forward: single fused pallas_call
# ----------------------------------------------------------------------------
@jax.jit
def encoder_forward(x_ids, params):
    S, B = x_ids.shape
    table = params["embedding"]                 # (V, E)
    V, E = table.shape
    lstm = params["lstm"]
    num_layers = len(lstm)
    H = lstm[0]["w_hh_t"].shape[0]

    ids_flat = x_ids.reshape(S * B).astype(jnp.int32)
    table3 = table.reshape(V, 1, E)             # leading gather axis (untiled)

    weight_args = []
    in_specs = [pl.BlockSpec((V, 1, E), lambda i, ids: (0, 0, 0))]
    for lp in lstm:
        in_dim = lp["w_ih_t"].shape[0]
        weight_args += [lp["w_ih_t"], lp["w_hh_t"], lp["bias"]]
        in_specs += [
            pl.BlockSpec((in_dim, 4 * H), lambda i, ids: (0, 0)),
            pl.BlockSpec((H, 4 * H), lambda i, ids: (0, 0)),
            pl.BlockSpec((1, 4 * H), lambda i, ids: (0, 0)),
        ]

    kernel = _make_encoder_kernel(S, B, E, H, num_layers)

    hidden, cell = pl.pallas_call(
        kernel,
        out_shape=(jax.ShapeDtypeStruct((num_layers, B, H), jnp.float32),
                   jax.ShapeDtypeStruct((num_layers, B, H), jnp.float32)),
        grid_spec=pltpu.PrefetchScalarGridSpec(
            num_scalar_prefetch=1,
            grid=(1,),
            in_specs=in_specs,
            out_specs=(
                pl.BlockSpec((num_layers, B, H), lambda i, ids: (0, 0, 0)),
                pl.BlockSpec((num_layers, B, H), lambda i, ids: (0, 0, 0)),
            ),
            scratch_shapes=[
                pltpu.VMEM((S * B, E), jnp.float32),   # gathered embeddings
                pltpu.VMEM((S * B, H), jnp.float32),   # inter-layer output sequence
            ],
        ),
        compiler_params=pltpu.CompilerParams(
            dimension_semantics=("arbitrary",)),
    )(ids_flat, table3, *weight_args)
    return hidden, cell


# ----------------------------------------------------------------------------
# Deterministic parameter construction (PyTorch-style init, synthetic weights)
# ----------------------------------------------------------------------------
def make_params(key, input_size, embedding_size, hidden_dim, num_layers):
    keys = jax.random.split(key, 1 + 4 * num_layers)
    params = {}
    params["embedding"] = jax.random.normal(
        keys[0], (input_size, embedding_size), dtype=jnp.float32)
    bound = 1.0 / jnp.sqrt(hidden_dim)
    lstm_params = []
    for layer in range(num_layers):
        in_dim = embedding_size if layer == 0 else hidden_dim
        k = keys[1 + 4 * layer: 1 + 4 * (layer + 1)]
        w_ih = jax.random.uniform(k[0], (4 * hidden_dim, in_dim),
                                  minval=-bound, maxval=bound, dtype=jnp.float32)
        w_hh = jax.random.uniform(k[1], (4 * hidden_dim, hidden_dim),
                                  minval=-bound, maxval=bound, dtype=jnp.float32)
        b_ih = jax.random.uniform(k[2], (4 * hidden_dim,),
                                  minval=-bound, maxval=bound, dtype=jnp.float32)
        b_hh = jax.random.uniform(k[3], (4 * hidden_dim,),
                                  minval=-bound, maxval=bound, dtype=jnp.float32)
        lstm_params.append({
            "w_ih_t": w_ih.T,                         # (in_dim, 4H)
            "w_hh_t": w_hh.T,                         # (H, 4H)
            "bias": (b_ih + b_hh).reshape(1, -1),     # (1, 4H)
        })
    params["lstm"] = lstm_params
    return params


# ----------------------------------------------------------------------------
# Pure-JAX reference (lax.scan LSTM) for a correctness spot-check
# ----------------------------------------------------------------------------
def reference_forward(x_ids, params):
    emb = params["embedding"][x_ids]                         # (S, B, E)
    layer_in = emb
    hiddens, cells = [], []
    for lp in params["lstm"]:
        H = lp["w_hh_t"].shape[0]
        B = emb.shape[1]

        def step(carry, x_t, lp=lp, H=H):
            h, c = carry
            gates = x_t @ lp["w_ih_t"] + h @ lp["w_hh_t"] + lp["bias"]
            i_g = jax.nn.sigmoid(gates[:, 0 * H:1 * H])
            f_g = jax.nn.sigmoid(gates[:, 1 * H:2 * H])
            g_g = jnp.tanh(gates[:, 2 * H:3 * H])
            o_g = jax.nn.sigmoid(gates[:, 3 * H:4 * H])
            c_new = f_g * c + i_g * g_g
            h_new = o_g * jnp.tanh(c_new)
            return (h_new, c_new), h_new

        init = (jnp.zeros((B, H), jnp.float32), jnp.zeros((B, H), jnp.float32))
        (h_fin, c_fin), out_seq = lax.scan(step, init, layer_in)
        hiddens.append(h_fin)
        cells.append(c_fin)
        layer_in = out_seq
    return jnp.stack(hiddens, 0), jnp.stack(cells, 0)


if __name__ == "__main__":
    # Small shapes consistent with the module's forward.
    input_size = 64        # vocab
    embedding_size = 32
    hidden_dim = 32
    num_layers = 2
    dropout = 0.1          # identity at eval
    S, B = 8, 2            # seq len, batch (time-major, like nn.LSTM default)

    key = jax.random.PRNGKey(0)
    k_param, k_ids = jax.random.split(key)
    params = make_params(k_param, input_size, embedding_size,
                         hidden_dim, num_layers)
    x_ids = jax.random.randint(k_ids, (S, B), 0, input_size, dtype=jnp.int32)

    hidden, cell = encoder_forward(x_ids, params)
    hidden, cell = jax.block_until_ready((hidden, cell))

    # Spot-check against pure-JAX reference (tolerance covers MXU pass precision).
    ref_hidden, ref_cell = reference_forward(x_ids, params)
    assert hidden.shape == (num_layers, B, hidden_dim)
    assert cell.shape == (num_layers, B, hidden_dim)
    assert jnp.allclose(hidden, ref_hidden, atol=1e-3, rtol=1e-3)
    assert jnp.allclose(cell, ref_cell, atol=1e-3, rtol=1e-3)

    print("KERNEL_OK")
</pallas_src>

<mosaic_0001>
module attributes {stable_mosaic.version = 11 : i64} {
  func.func @kernel(%arg0: i32, %arg1: memref<16xi32, #tpu.memory_space<smem>>, %arg2: memref<64x1x32xf32, #tpu.memory_space<vmem>>, %arg3: memref<32x128xf32, #tpu.memory_space<vmem>>, %arg4: memref<32x128xf32, #tpu.memory_space<vmem>>, %arg5: memref<1x128xf32, #tpu.memory_space<vmem>>, %arg6: memref<32x128xf32, #tpu.memory_space<vmem>>, %arg7: memref<32x128xf32, #tpu.memory_space<vmem>>, %arg8: memref<1x128xf32, #tpu.memory_space<vmem>>, %arg9: memref<2x2x32xf32, #tpu.memory_space<vmem>>, %arg10: memref<2x2x32xf32, #tpu.memory_space<vmem>>, %arg11: memref<16x32xf32, #tpu.memory_space<vmem>>, %arg12: memref<16x32xf32, #tpu.memory_space<vmem>>) attributes {dimension_semantics = [#tpu.dimension_semantics<arbitrary>], iteration_bounds = array<i64: 1>, scalar_prefetch = 1 : i64, scratch_operands = 2 : i64, tpu.core_type = #tpu.core_type<tc>, window_params = [{pipeline_mode = #tpu.pipeline_mode<synchronous>, transform_indices = @transform_0, window_bounds = array<i64: 64, 1, 32>}, {pipeline_mode = #tpu.pipeline_mode<synchronous>, transform_indices = @transform_1, window_bounds = array<i64: 32, 128>}, {pipeline_mode = #tpu.pipeline_mode<synchronous>, transform_indices = @transform_2, window_bounds = array<i64: 32, 128>}, {pipeline_mode = #tpu.pipeline_mode<synchronous>, transform_indices = @transform_3, window_bounds = array<i64: 1, 128>}, {pipeline_mode = #tpu.pipeline_mode<synchronous>, transform_indices = @transform_4, window_bounds = array<i64: 32, 128>}, {pipeline_mode = #tpu.pipeline_mode<synchronous>, transform_indices = @transform_5, window_bounds = array<i64: 32, 128>}, {pipeline_mode = #tpu.pipeline_mode<synchronous>, transform_indices = @transform_6, window_bounds = array<i64: 1, 128>}, {pipeline_mode = #tpu.pipeline_mode<synchronous>, transform_indices = @transform_7, window_bounds = array<i64: 2, 2, 32>}, {pipeline_mode = #tpu.pipeline_mode<synchronous>, transform_indices = @transform_8, window_bounds = array<i64: 2, 2, 32>}]} {
    %c0 = arith.constant 0 : index
    %0 = memref.load %arg1[%c0] : memref<16xi32, #tpu.memory_space<smem>>
    %1 = arith.index_cast %0 : i32 to index
    %c0_0 = arith.constant 0 : index
    %c0_1 = arith.constant 0 : index
    %2 = vector.load %arg2[%1, %c0_0, %c0_1] : memref<64x1x32xf32, #tpu.memory_space<vmem>>, vector<1x1x32xf32>
    %3 = vector.shape_cast %2 : vector<1x1x32xf32> to vector<1x32xf32>
    %c0_2 = arith.constant 0 : index
    %c0_3 = arith.constant 0 : index
    %4 = vector.load %arg11[%c0_2, %c0_3] : memref<16x32xf32, #tpu.memory_space<vmem>>, vector<1x32xf32>
    tpu.vector_store %arg11[%c0_2, %c0_3], %3 {strides = array<i32>} : memref<16x32xf32, #tpu.memory_space<vmem>>, vector<1x32xf32>,
    %c1 = arith.constant 1 : index
    %5 = memref.load %arg1[%c1] : memref<16xi32, #tpu.memory_space<smem>>
    %6 = arith.index_cast %5 : i32 to index
    %c0_4 = arith.constant 0 : index
    %c0_5 = arith.constant 0 : index
    %7 = vector.load %arg2[%6, %c0_4, %c0_5] : memref<64x1x32xf32, #tpu.memory_space<vmem>>, vector<1x1x32xf32>
    %8 = vector.shape_cast %7 : vector<1x1x32xf32> to vector<1x32xf32>
    %c1_6 = arith.constant 1 : index
    %c0_7 = arith.constant 0 : index
    %9 = vector.load %arg11[%c1_6, %c0_7] : memref<16x32xf32, #tpu.memory_space<vmem>>, vector<1x32xf32>
    tpu.vector_store %arg11[%c1_6, %c0_7], %8 {strides = array<i32>} : memref<16x32xf32, #tpu.memory_space<vmem>>, vector<1x32xf32>,
    %c2 = arith.constant 2 : index
    %10 = memref.load %arg1[%c2] : memref<16xi32, #tpu.memory_space<smem>>
    %11 = arith.index_cast %10 : i32 to index
    %c0_8 = arith.constant 0 : index
    %c0_9 = arith.constant 0 : index
    %12 = vector.load %arg2[%11, %c0_8, %c0_9] : memref<64x1x32xf32, #tpu.memory_space<vmem>>, vector<1x1x32xf32>
    %13 = vector.shape_cast %12 : vector<1x1x32xf32> to vector<1x32xf32>
    %c2_10 = arith.constant 2 : index
    %c0_11 = arith.constant 0 : index
    %14 = vector.load %arg11[%c2_10, %c0_11] : memref<16x32xf32, #tpu.memory_space<vmem>>, vector<1x32xf32>
    tpu.vector_store %arg11[%c2_10, %c0_11], %13 {strides = array<i32>} : memref<16x32xf32, #tpu.memory_space<vmem>>, vector<1x32xf32>,
    %c3 = arith.constant 3 : index
    %15 = memref.load %arg1[%c3] : memref<16xi32, #tpu.memory_space<smem>>
    %16 = arith.index_cast %15 : i32 to index
    %c0_12 = arith.constant 0 : index
    %c0_13 = arith.constant 0 : index
    %17 = vector.load %arg2[%16, %c0_12, %c0_13] : memref<64x1x32xf32, #tpu.memory_space<vmem>>, vector<1x1x32xf32>
    %18 = vector.shape_cast %17 : vector<1x1x32xf32> to vector<1x32xf32>
    %c3_14 = arith.constant 3 : index
    %c0_15 = arith.constant 0 : index
    %19 = vector.load %arg11[%c3_14, %c0_15] : memref<16x32xf32, #tpu.memory_space<vmem>>, vector<1x32xf32>
    tpu.vector_store %arg11[%c3_14, %c0_15], %18 {strides = array<i32>} : memref<16x32xf32, #tpu.memory_space<vmem>>, vector<1x32xf32>,
    %c4 = arith.constant 4 : index
    %20 = memref.load %arg1[%c4] : memref<16xi32, #tpu.memory_space<smem>>
    %21 = arith.index_cast %20 : i32 to index
    %c0_16 = arith.constant 0 : index
    %c0_17 = arith.constant 0 : index
    %22 = vector.load %arg2[%21, %c0_16, %c0_17] : memref<64x1x32xf32, #tpu.memory_space<vmem>>, vector<1x1x32xf32>
    %23 = vector.shape_cast %22 : vector<1x1x32xf32> to vector<1x32xf32>
    %c4_18 = arith.constant 4 : index
    %c0_19 = arith.constant 0 : index
    %24 = vector.load %arg11[%c4_18, %c0_19] : memref<16x32xf32, #tpu.memory_space<vmem>>, vector<1x32xf32>
    tpu.vector_store %arg11[%c4_18, %c0_19], %23 {strides = array<i32>} : memref<16x32xf32, #tpu.memory_space<vmem>>, vector<1x32xf32>,
    %c5 = arith.constant 5 : index
    %25 = memref.load %arg1[%c5] : memref<16xi32, #tpu.memory_space<smem>>
    %26 = arith.index_cast %25 : i32 to index
    %c0_20 = arith.constant 0 : index
    %c0_21 = arith.constant 0 : index
    %27 = vector.load %arg2[%26, %c0_20, %c0_21] : memref<64x1x32xf32, #tpu.memory_space<vmem>>, vector<1x1x32xf32>
    %28 = vector.shape_cast %27 : vector<1x1x32xf32> to vector<1x32xf32>
    %c5_22 = arith.constant 5 : index
    %c0_23 = arith.constant 0 : index
    %29 = vector.load %arg11[%c5_22, %c0_23] : memref<16x32xf32, #tpu.memory_space<vmem>>, vector<1x32xf32>
    tpu.vector_store %arg11[%c5_22, %c0_23], %28 {strides = array<i32>} : memref<16x32xf32, #tpu.memory_space<vmem>>, vector<1x32xf32>,
    %c6 = arith.constant 6 : index
    %30 = memref.load %arg1[%c6] : memref<16xi32, #tpu.memory_space<smem>>
    %31 = arith.index_cast %30 : i32 to index
    %c0_24 = arith.constant 0 : index
    %c0_25 = arith.constant 0 : index
    %32 = vector.load %arg2[%31, %c0_24, %c0_25] : memref<64x1x32xf32, #tpu.memory_space<vmem>>, vector<1x1x32xf32>
    %33 = vector.shape_cast %32 : vector<1x1x32xf32> to vector<1x32xf32>
    %c6_26 = arith.constant 6 : index
    %c0_27 = arith.constant 0 : index
    %34 = vector.load %arg11[%c6_26, %c0_27] : memref<16x32xf32, #tpu.memory_space<vmem>>, vector<1x32xf32>
    tpu.vector_store %arg11[%c6_26, %c0_27], %33 {strides = array<i32>} : memref<16x32xf32, #tpu.memory_space<vmem>>, vector<1x32xf32>,
    %c7 = arith.constant 7 : index
    %35 = memref.load %arg1[%c7] : memref<16xi32, #tpu.memory_space<smem>>
    %36 = arith.index_cast %35 : i32 to index
    %c0_28 = arith.constant 0 : index
    %c0_29 = arith.constant 0 : index
    %37 = vector.load %arg2[%36, %c0_28, %c0_29] : memref<64x1x32xf32, #tpu.memory_space<vmem>>, vector<1x1x32xf32>
    %38 = vector.shape_cast %37 : vector<1x1x32xf32> to vector<1x32xf32>
    %c7_30 = arith.constant 7 : index
    %c0_31 = arith.constant 0 : index
    %39 = vector.load %arg11[%c7_30, %c0_31] : memref<16x32xf32, #tpu.memory_space<vmem>>, vector<1x32xf32>
    tpu.vector_store %arg11[%c7_30, %c0_31], %38 {strides = array<i32>} : memref<16x32xf32, #tpu.memory_space<vmem>>, vector<1x32xf32>,
    %c8 = arith.constant 8 : index
    %40 = memref.load %arg1[%c8] : memref<16xi32, #tpu.memory_space<smem>>
    %41 = arith.index_cast %40 : i32 to index
    %c0_32 = arith.constant 0 : index
    %c0_33 = arith.constant 0 : index
    %42 = vector.load %arg2[%41, %c0_32, %c0_33] : memref<64x1x32xf32, #tpu.memory_space<vmem>>, vector<1x1x32xf32>
    %43 = vector.shape_cast %42 : vector<1x1x32xf32> to vector<1x32xf32>
    %c8_34 = arith.constant 8 : index
    %c0_35 = arith.constant 0 : index
    %44 = vector.load %arg11[%c8_34, %c0_35] : memref<16x32xf32, #tpu.memory_space<vmem>>, vector<1x32xf32>
    tpu.vector_store %arg11[%c8_34, %c0_35], %43 {strides = array<i32>} : memref<16x32xf32, #tpu.memory_space<vmem>>, vector<1x32xf32>,
    %c9 = arith.constant 9 : index
    %45 = memref.load %arg1[%c9] : memref<16xi32, #tpu.memory_space<smem>>
    %46 = arith.index_cast %45 : i32 to index
    %c0_36 = arith.constant 0 : index
    %c0_37 = arith.constant 0 : index
    %47 = vector.load %arg2[%46, %c0_36, %c0_37] : memref<64x1x32xf32, #tpu.memory_space<vmem>>, vector<1x1x32xf32>
    %48 = vector.shape_cast %47 : vector<1x1x32xf32> to vector<1x32xf32>
    %c9_38 = arith.constant 9 : index
    %c0_39 = arith.constant 0 : index
    %49 = vector.load %arg11[%c9_38, %c0_39] : memref<16x32xf32, #tpu.memory_space<vmem>>, vector<1x32xf32>
    tpu.vector_store %arg11[%c9_38, %c0_39], %48 {strides = array<i32>} : memref<16x32xf32, #tpu.memory_space<vmem>>, vector<1x32xf32>,
    %c10 = arith.constant 10 : index
    %50 = memref.load %arg1[%c10] : memref<16xi32, #tpu.memory_space<smem>>
    %51 = arith.index_cast %50 : i32 to index
    %c0_40 = arith.constant 0 : index
    %c0_41 = arith.constant 0 : index
    %52 = vector.load %arg2[%51, %c0_40, %c0_41] : memref<64x1x32xf32, #tpu.memory_space<vmem>>, vector<1x1x32xf32>
    %53 = vector.shape_cast %52 : vector<1x1x32xf32> to vector<1x32xf32>
    %c10_42 = arith.constant 10 : index
    %c0_43 = arith.constant 0 : index
    %54 = vector.load %arg11[%c10_42, %c0_43] : memref<16x32xf32, #tpu.memory_space<vmem>>, vector<1x32xf32>
    tpu.vector_store %arg11[%c10_42, %c0_43], %53 {strides = array<i32>} : memref<16x32xf32, #tpu.memory_space<vmem>>, vector<1x32xf32>,
    %c11 = arith.constant 11 : index
    %55 = memref.load %arg1[%c11] : memref<16xi32, #tpu.memory_space<smem>>
    %56 = arith.index_cast %55 : i32 to index
    %c0_44 = arith.constant 0 : index
    %c0_45 = arith.constant 0 : index
    %57 = vector.load %arg2[%56, %c0_44, %c0_45] : memref<64x1x32xf32, #tpu.memory_space<vmem>>, vector<1x1x32xf32>
    %58 = vector.shape_cast %57 : vector<1x1x32xf32> to vector<1x32xf32>
    %c11_46 = arith.constant 11 : index
    %c0_47 = arith.constant 0 : index
    %59 = vector.load %arg11[%c11_46, %c0_47] : memref<16x32xf32, #tpu.memory_space<vmem>>, vector<1x32xf32>
    tpu.vector_store %arg11[%c11_46, %c0_47], %58 {strides = array<i32>} : memref<16x32xf32, #tpu.memory_space<vmem>>, vector<1x32xf32>,
    %c12 = arith.constant 12 : index
    %60 = memref.load %arg1[%c12] : memref<16xi32, #tpu.memory_space<smem>>
    %61 = arith.index_cast %60 : i32 to index
    %c0_48 = arith.constant 0 : index
    %c0_49 = arith.constant 0 : index
    %62 = vector.load %arg2[%61, %c0_48, %c0_49] : memref<64x1x32xf32, #tpu.memory_space<vmem>>, vector<1x1x32xf32>
    %63 = vector.shape_cast %62 : vector<1x1x32xf32> to vector<1x32xf32>
    %c12_50 = arith.constant 12 : index
    %c0_51 = arith.constant 0 : index
    %64 = vector.load %arg11[%c12_50, %c0_51] : memref<16x32xf32, #tpu.memory_space<vmem>>, vector<1x32xf32>
    tpu.vector_store %arg11[%c12_50, %c0_51], %63 {strides = array<i32>} : memref<16x32xf32, #tpu.memory_space<vmem>>, vector<1x32xf32>,
    %c13 = arith.constant 13 : index
    %65 = memref.load %arg1[%c13] : memref<16xi32, #tpu.memory_space<smem>>
    %66 = arith.index_cast %65 : i32 to index
    %c0_52 = arith.constant 0 : index
    %c0_53 = arith.constant 0 : index
    %67 = vector.load %arg2[%66, %c0_52, %c0_53] : memref<64x1x32xf32, #tpu.memory_space<vmem>>, vector<1x1x32xf32>
    %68 = vector.shape_cast %67 : vector<1x1x32xf32> to vector<1x32xf32>
    %c13_54 = arith.constant 13 : index
    %c0_55 = arith.constant 0 : index
    %69 = vector.load %arg11[%c13_54, %c0_55] : memref<16x32xf32, #tpu.memory_space<vmem>>, vector<1x32xf32>
    tpu.vector_store %arg11[%c13_54, %c0_55], %68 {strides = array<i32>} : memref<16x32xf32, #tpu.memory_space<vmem>>, vector<1x32xf32>,
    %c14 = arith.constant 14 : index
    %70 = memref.load %arg1[%c14] : memref<16xi32, #tpu.memory_space<smem>>
    %71 = arith.index_cast %70 : i32 to index
    %c0_56 = arith.constant 0 : index
    %c0_57 = arith.constant 0 : index
    %72 = vector.load %arg2[%71, %c0_56, %c0_57] : memref<64x1x32xf32, #tpu.memory_space<vmem>>, vector<1x1x32xf32>
    %73 = vector.shape_cast %72 : vector<1x1x32xf32> to vector<1x32xf32>
    %c14_58 = arith.constant 14 : index
    %c0_59 = arith.constant 0 : index
    %74 = vector.load %arg11[%c14_58, %c0_59] : memref<16x32xf32, #tpu.memory_space<vmem>>, vector<1x32xf32>
    tpu.vector_store %arg11[%c14_58, %c0_59], %73 {strides = array<i32>} : memref<16x32xf32, #tpu.memory_space<vmem>>, vector<1x32xf32>,
    %c15 = arith.constant 15 : index
    %75 = memref.load %arg1[%c15] : memref<16xi32, #tpu.memory_space<smem>>
    %76 = arith.index_cast %75 : i32 to index
    %c0_60 = arith.constant 0 : index
    %c0_61 = arith.constant 0 : index
    %77 = vector.load %arg2[%76, %c0_60, %c0_61] : memref<64x1x32xf32, #tpu.memory_space<vmem>>, vector<1x1x32xf32>
    %78 = vector.shape_cast %77 : vector<1x1x32xf32> to vector<1x32xf32>
    %c15_62 = arith.constant 15 : index
    %c0_63 = arith.constant 0 : index
    %79 = vector.load %arg11[%c15_62, %c0_63] : memref<16x32xf32, #tpu.memory_space<vmem>>, vector<1x32xf32>
    tpu.vector_store %arg11[%c15_62, %c0_63], %78 {strides = array<i32>} : memref<16x32xf32, #tpu.memory_space<vmem>>, vector<1x32xf32>,
    %c0_64 = arith.constant 0 : index
    %c0_65 = arith.constant 0 : index
    %80 = vector.load %arg11[%c0_64, %c0_65] : memref<16x32xf32, #tpu.memory_space<vmem>>, vector<16x32xf32>
    %c0_66 = arith.constant 0 : index
    %c0_67 = arith.constant 0 : index
    %81 = vector.load %arg3[%c0_66, %c0_67] : memref<32x128xf32, #tpu.memory_space<vmem>>, vector<32x128xf32>
    %c0_68 = arith.constant 0 : index
    %c0_69 = arith.constant 0 : index
    %82 = vector.load %arg4[%c0_68, %c0_69] : memref<32x128xf32, #tpu.memory_space<vmem>>, vector<32x128xf32>
    %c0_70 = arith.constant 0 : index
    %c0_71 = arith.constant 0 : index
    %83 = vector.load %arg5[%c0_70, %c0_71] : memref<1x128xf32, #tpu.memory_space<vmem>>, vector<1x128xf32>
    %cst = arith.constant dense<0.000000e+00> : vector<16x128xf32>
    %84 = tpu.matmul %80, %81, %cst {dimension_numbers = #tpu.dot_dimension_numbers<[1], [0], [0], [1], [0, 0, 1, 1], [], []>} : vector<16x32xf32>, vector<32x128xf32>, vector<16x128xf32> -> vector<16x128xf32>
    %85 = vector.broadcast %83 : vector<1x128xf32> to vector<16x128xf32>
    %86 = arith.addf %84, %85 : vector<16x128xf32>
    %cst_72 = arith.constant 0.000000e+00 : f32
    %87 = vector.broadcast %cst_72 : f32 to vector<2x32xf32>
    %cst_73 = arith.constant 0.000000e+00 : f32
    %88 = vector.broadcast %cst_73 : f32 to vector<2x32xf32>
    %89 = vector.extract_strided_slice %86 {offsets = [0, 0], sizes = [2, 128], strides = [1, 1]} : vector<16x128xf32> to vector<2x128xf32>
    %cst_74 = arith.constant dense<0.000000e+00> : vector<2x128xf32>
    %90 = tpu.matmul %87, %82, %cst_74 {dimension_numbers = #tpu.dot_dimension_numbers<[1], [0], [0], [1], [0, 0, 1, 1], [], []>} : vector<2x32xf32>, vector<32x128xf32>, vector<2x128xf32> -> vector<2x128xf32>
    %91 = arith.addf %89, %90 : vector<2x128xf32>
    %92 = vector.extract_strided_slice %91 {offsets = [0, 0], sizes = [2, 32], strides = [1, 1]} : vector<2x128xf32> to vector<2x32xf32>
    %93 = arith.negf %92 : vector<2x32xf32>
    %94 = math.exp %93 : vector<2x32xf32>
    %cst_75 = arith.constant 1.000000e+00 : f32
    %95 = vector.broadcast %cst_75 : f32 to vector<2x32xf32>
    %96 = arith.addf %95, %94 : vector<2x32xf32>
    %97 = arith.divf %95, %96 : vector<2x32xf32>
    %98 = vector.extract_strided_slice %91 {offsets = [0, 32], sizes = [2, 32], strides = [1, 1]} : vector<2x128xf32> to vector<2x32xf32>
    %99 = arith.negf %98 : vector<2x32xf32>
    %100 = math.exp %99 : vector<2x32xf32>
    %cst_76 = arith.constant 1.000000e+00 : f32
    %101 = vector.broadcast %cst_76 : f32 to vector<2x32xf32>
    %102 = arith.addf %101, %100 : vector<2x32xf32>
    %103 = arith.divf %101, %102 : vector<2x32xf32>
    %104 = vector.extract_strided_slice %91 {offsets = [0, 64], sizes = [2, 32], strides = [1, 1]} : vector<2x128xf32> to vector<2x32xf32>
    %105 = math.tanh %104 : vector<2x32xf32>
    %106 = vector.extract_strided_slice %91 {offsets = [0, 96], sizes = [2, 32], strides = [1, 1]} : vector<2x128xf32> to vector<2x32xf32>
    %107 = arith.negf %106 : vector<2x32xf32>
    %108 = math.exp %107 : vector<2x32xf32>
    %cst_77 = arith.constant 1.000000e+00 : f32
    %109 = vector.broadcast %cst_77 : f32 to vector<2x32xf32>
    %110 = arith.addf %109, %108 : vector<2x32xf32>
    %111 = arith.divf %109, %110 : vector<2x32xf32>
    %112 = arith.mulf %103, %88 : vector<2x32xf32>
    %113 = arith.mulf %97, %105 : vector<2x32xf32>
    %114 = arith.addf %112, %113 : vector<2x32xf32>
    %115 = math.tanh %114 : vector<2x32xf32>
    %116 = arith.mulf %111, %115 : vector<2x32xf32>
    %c0_78 = arith.constant 0 : index
    %c0_79 = arith.constant 0 : index
    %117 = vector.load %arg12[%c0_78, %c0_79] : memref<16x32xf32, #tpu.memory_space<vmem>>, vector<2x32xf32>
    tpu.vector_store %arg12[%c0_78, %c0_79], %116 {strides = array<i32>} : memref<16x32xf32, #tpu.memory_space<vmem>>, vector<2x32xf32>,
    %118 = vector.extract_strided_slice %86 {offsets = [2, 0], sizes = [2, 128], strides = [1, 1]} : vector<16x128xf32> to vector<2x128xf32>
    %cst_80 = arith.constant dense<0.000000e+00> : vector<2x128xf32>
    %119 = tpu.matmul %116, %82, %cst_80 {dimension_numbers = #tpu.dot_dimension_numbers<[1], [0], [0], [1], [0, 0, 1, 1], [], []>} : vector<2x32xf32>, vector<32x128xf32>, vector<2x128xf32> -> vector<2x128xf32>
    %120 = arith.addf %118, %119 : vector<2x128xf32>
    %121 = vector.extract_strided_slice %120 {offsets = [0, 0], sizes = [2, 32], strides = [1, 1]} : vector<2x128xf32> to vector<2x32xf32>
    %122 = arith.negf %121 : vector<2x32xf32>
    %123 = math.exp %122 : vector<2x32xf32>
    %cst_81 = arith.constant 1.000000e+00 : f32
    %124 = vector.broadcast %cst_81 : f32 to vector<2x32xf32>
    %125 = arith.addf %124, %123 : vector<2x32xf32>
    %126 = arith.divf %124, %125 : vector<2x32xf32>
    %127 = vector.extract_strided_slice %120 {offsets = [0, 32], sizes = [2, 32], strides = [1, 1]} : vector<2x128xf32> to vector<2x32xf32>
    %128 = arith.negf %127 : vector<2x32xf32>
    %129 = math.exp %128 : vector<2x32xf32>
    %cst_82 = arith.constant 1.000000e+00 : f32
    %130 = vector.broadcast %cst_82 : f32 to vector<2x32xf32>
    %131 = arith.addf %130, %129 : vector<2x32xf32>
    %132 = arith.divf %130, %131 : vector<2x32xf32>
    %133 = vector.extract_strided_slice %120 {offsets = [0, 64], sizes = [2, 32], strides = [1, 1]} : vector<2x128xf32> to vector<2x32xf32>
    %134 = math.tanh %133 : vector<2x32xf32>
    %135 = vector.extract_strided_slice %120 {offsets = [0, 96], sizes = [2, 32], strides = [1, 1]} : vector<2x128xf32> to vector<2x32xf32>
    %136 = arith.negf %135 : vector<2x32xf32>
    %137 = math.exp %136 : vector<2x32xf32>
    %cst_83 = arith.constant 1.000000e+00 : f32
    %138 = vector.broadcast %cst_83 : f32 to vector<2x32xf32>
    %139 = arith.addf %138, %137 : vector<2x32xf32>
    %140 = arith.divf %138, %139 : vector<2x32xf32>
    %141 = arith.mulf %132, %114 : vector<2x32xf32>
    %142 = arith.mulf %126, %134 : vector<2x32xf32>
    %143 = arith.addf %141, %142 : vector<2x32xf32>
    %144 = math.tanh %143 : vector<2x32xf32>
    %145 = arith.mulf %140, %144 : vector<2x32xf32>
    %c2_84 = arith.constant 2 : index
    %c0_85 = arith.constant 0 : index
    %146 = vector.load %arg12[%c2_84, %c0_85] : memref<16x32xf32, #tpu.memory_space<vmem>>, vector<2x32xf32>
    tpu.vector_store %arg12[%c2_84, %c0_85], %145 {strides = array<i32>} : memref<16x32xf32, #tpu.memory_space<vmem>>, vector<2x32xf32>,
    %147 = vector.extract_strided_slice %86 {offsets = [4, 0], sizes = [2, 128], strides = [1, 1]} : vector<16x128xf32> to vector<2x128xf32>
    %cst_86 = arith.constant dense<0.000000e+00> : vector<2x128xf32>
    %148 = tpu.matmul %145, %82, %cst_86 {dimension_numbers = #tpu.dot_dimension_numbers<[1], [0], [0], [1], [0, 0, 1, 1], [], []>} : vector<2x32xf32>, vector<32x128xf32>, vector<2x128xf32> -> vector<2x128xf32>
    %149 = arith.addf %147, %148 : vector<2x128xf32>
    %150 = vector.extract_strided_slice %149 {offsets = [0, 0], sizes = [2, 32], strides = [1, 1]} : vector<2x128xf32> to vector<2x32xf32>
    %151 = arith.negf %150 : vector<2x32xf32>
    %152 = math.exp %151 : vector<2x32xf32>
    %cst_87 = arith.constant 1.000000e+00 : f32
    %153 = vector.broadcast %cst_87 : f32 to vector<2x32xf32>
    %154 = arith.addf %153, %152 : vector<2x32xf32>
    %155 = arith.divf %153, %154 : vector<2x32xf32>
    %156 = vector.extract_strided_slice %149 {offsets = [0, 32], sizes = [2, 32], strides = [1, 1]} : vector<2x128xf32> to vector<2x32xf32>
    %157 = arith.negf %156 : vector<2x32xf32>
    %158 = math.exp %157 : vector<2x32xf32>
    %cst_88 = arith.constant 1.000000e+00 : f32
    %159 = vector.broadcast %cst_88 : f32 to vector<2x32xf32>
    %160 = arith.addf %159, %158 : vector<2x32xf32>
    %161 = arith.divf %159, %160 : vector<2x32xf32>
    %162 = vector.extract_strided_slice %149 {offsets = [0, 64], sizes = [2, 32], strides = [1, 1]} : vector<2x128xf32> to vector<2x32xf32>
    %163 = math.tanh %162 : vector<2x32xf32>
    %164 = vector.extract_strided_slice %149 {offsets = [0, 96], sizes = [2, 32], strides = [1, 1]} : vector<2x128xf32> to vector<2x32xf32>
    %165 = arith.negf %164 : vector<2x32xf32>
    %166 = math.exp %165 : vector<2x32xf32>
    %cst_89 = arith.constant 1.000000e+00 : f32
    %167 = vector.broadcast %cst_89 : f32 to vector<2x32xf32>
    %168 = arith.addf %167, %166 : vector<2x32xf32>
    %169 = arith.divf %167, %168 : vector<2x32xf32>
    %170 = arith.mulf %161, %143 : vector<2x32xf32>
    %171 = arith.mulf %155, %163 : vector<2x32xf32>
    %172 = arith.addf %170, %171 : vector<2x32xf32>
    %173 = math.tanh %172 : vector<2x32xf32>
    %174 = arith.mulf %169, %173 : vector<2x32xf32>
    %c4_90 = arith.constant 4 : index
    %c0_91 = arith.constant 0 : index
    %175 = vector.load %arg12[%c4_90, %c0_91] : memref<16x32xf32, #tpu.memory_space<vmem>>, vector<2x32xf32>
    tpu.vector_store %arg12[%c4_90, %c0_91], %174 {strides = array<i32>} : memref<16x32xf32, #tpu.memory_space<vmem>>, vector<2x32xf32>,
    %176 = vector.extract_strided_slice %86 {offsets = [6, 0], sizes = [2, 128], strides = [1, 1]} : vector<16x128xf32> to vector<2x128xf32>
    %cst_92 = arith.constant dense<0.000000e+00> : vector<2x128xf32>
    %177 = tpu.matmul %174, %82, %cst_92 {dimension_numbers = #tpu.dot_dimension_numbers<[1], [0], [0], [1], [0, 0, 1, 1], [], []>} : vector<2x32xf32>, vector<32x128xf32>, vector<2x128xf32> -> vector<2x128xf32>
    %178 = arith.addf %176, %177 : vector<2x128xf32>
    %179 = vector.extract_strided_slice %178 {offsets = [0, 0], sizes = [2, 32], strides = [1, 1]} : vector<2x128xf32> to vector<2x32xf32>
    %180 = arith.negf %179 : vector<2x32xf32>
    %181 = math.exp %180 : vector<2x32xf32>
    %cst_93 = arith.constant 1.000000e+00 : f32
    %182 = vector.broadcast %cst_93 : f32 to vector<2x32xf32>
    %183 = arith.addf %182, %181 : vector<2x32xf32>
    %184 = arith.divf %182, %183 : vector<2x32xf32>
    %185 = vector.extract_strided_slice %178 {offsets = [0, 32], sizes = [2, 32], strides = [1, 1]} : vector<2x128xf32> to vector<2x32xf32>
    %186 = arith.negf %185 : vector<2x32xf32>
    %187 = math.exp %186 : vector<2x32xf32>
    %cst_94 = arith.constant 1.000000e+00 : f32
    %188 = vector.broadcast %cst_94 : f32 to vector<2x32xf32>
    %189 = arith.addf %188, %187 : vector<2x32xf32>
    %190 = arith.divf %188, %189 : vector<2x32xf32>
    %191 = vector.extract_strided_slice %178 {offsets = [0, 64], sizes = [2, 32], strides = [1, 1]} : vector<2x128xf32> to vector<2x32xf32>
    %192 = math.tanh %191 : vector<2x32xf32>
    %193 = vector.extract_strided_slice %178 {offsets = [0, 96], sizes = [2, 32], strides = [1, 1]} : vector<2x128xf32> to vector<2x32xf32>
    %194 = arith.negf %193 : vector<2x32xf32>
    %195 = math.exp %194 : vector<2x32xf32>
    %cst_95 = arith.constant 1.000000e+00 : f32
    %196 = vector.broadcast %cst_95 : f32 to vector<2x32xf32>
    %197 = arith.addf %196, %195 : vector<2x32xf32>
    %198 = arith.divf %196, %197 : vector<2x32xf32>
    %199 = arith.mulf %190, %172 : vector<2x32xf32>
    %200 = arith.mulf %184, %192 : vector<2x32xf32>
    %201 = arith.addf %199, %200 : vector<2x32xf32>
    %202 = math.tanh %201 : vector<2x32xf32>
    %203 = arith.mulf %198, %202 : vector<2x32xf32>
    %c6_96 = arith.constant 6 : index
    %c0_97 = arith.constant 0 : index
    %204 = vector.load %arg12[%c6_96, %c0_97] : memref<16x32xf32, #tpu.memory_space<vmem>>, vector<2x32xf32>
    tpu.vector_store %arg12[%c6_96, %c0_97], %203 {strides = array<i32>} : memref<16x32xf32, #tpu.memory_space<vmem>>, vector<2x32xf32>,
    %205 = vector.extract_strided_slice %86 {offsets = [8, 0], sizes = [2, 128], strides = [1, 1]} : vector<16x128xf32> to vector<2x128xf32>
    %cst_98 = arith.constant dense<0.000000e+00> : vector<2x128xf32>
    %206 = tpu.matmul %203, %82, %cst_98 {dimension_numbers = #tpu.dot_dimension_numbers<[1], [0], [0], [1], [0, 0, 1, 1], [], []>} : vector<2x32xf32>, vector<32x128xf32>, vector<2x128xf32> -> vector<2x128xf32>
    %207 = arith.addf %205, %206 : vector<2x128xf32>
    %208 = vector.extract_strided_slice %207 {offsets = [0, 0], sizes = [2, 32], strides = [1, 1]} : vector<2x128xf32> to vector<2x32xf32>
    %209 = arith.negf %208 : vector<2x32xf32>
    %210 = math.exp %209 : vector<2x32xf32>
    %cst_99 = arith.constant 1.000000e+00 : f32
    %211 = vector.broadcast %cst_99 : f32 to vector<2x32xf32>
    %212 = arith.addf %211, %210 : vector<2x32xf32>
    %213 = arith.divf %211, %212 : vector<2x32xf32>
    %214 = vector.extract_strided_slice %207 {offsets = [0, 32], sizes = [2, 32], strides = [1, 1]} : vector<2x128xf32> to vector<2x32xf32>
    %215 = arith.negf %214 : vector<2x32xf32>
    %216 = math.exp %215 : vector<2x32xf32>
    %cst_100 = arith.constant 1.000000e+00 : f32
    %217 = vector.broadcast %cst_100 : f32 to vector<2x32xf32>
    %218 = arith.addf %217, %216 : vector<2x32xf32>
    %219 = arith.divf %217, %218 : vector<2x32xf32>
    %220 = vector.extract_strided_slice %207 {offsets = [0, 64], sizes = [2, 32], strides = [1, 1]} : vector<2x128xf32> to vector<2x32xf32>
    %221 = math.tanh %220 : vector<2x32xf32>
    %222 = vector.extract_strided_slice %207 {offsets = [0, 96], sizes = [2, 32], strides = [1, 1]} : vector<2x128xf32> to vector<2x32xf32>
    %223 = arith.negf %222 : vector<2x32xf32>
    %224 = math.exp %223 : vector<2x32xf32>
    %cst_101 = arith.constant 1.000000e+00 : f32
    %225 = vector.broadcast %cst_101 : f32 to vector<2x32xf32>
    %226 = arith.addf %225, %224 : vector<2x32xf32>
    %227 = arith.divf %225, %226 : vector<2x32xf32>
    %228 = arith.mulf %219, %201 : vector<2x32xf32>
    %229 = arith.mulf %213, %221 : vector<2x32xf32>
    %230 = arith.addf %228, %229 : vector<2x32xf32>
    %231 = math.tanh %230 : vector<2x32xf32>
    %232 = arith.mulf %227, %231 : vector<2x32xf32>
    %c8_102 = arith.constant 8 : index
    %c0_103 = arith.constant 0 : index
    %233 = vector.load %arg12[%c8_102, %c0_103] : memref<16x32xf32, #tpu.memory_space<vmem>>, vector<2x32xf32>
    tpu.vector_store %arg12[%c8_102, %c0_103], %232 {strides = array<i32>} : memref<16x32xf32, #tpu.memory_space<vmem>>, vector<2x32xf32>,
    %234 = vector.extract_strided_slice %86 {offsets = [10, 0], sizes = [2, 128], strides = [1, 1]} : vector<16x128xf32> to vector<2x128xf32>
    %cst_104 = arith.constant dense<0.000000e+00> : vector<2x128xf32>
    %235 = tpu.matmul %232, %82, %cst_104 {dimension_numbers = #tpu.dot_dimension_numbers<[1], [0], [0], [1], [0, 0, 1, 1], [], []>} : vector<2x32xf32>, vector<32x128xf32>, vector<2x128xf32> -> vector<2x128xf32>
    %236 = arith.addf %234, %235 : vector<2x128xf32>
    %237 = vector.extract_strided_slice %236 {offsets = [0, 0], sizes = [2, 32], strides = [1, 1]} : vector<2x128xf32> to vector<2x32xf32>
    %238 = arith.negf %237 : vector<2x32xf32>
    %239 = math.exp %238 : vector<2x32xf32>
    %cst_105 = arith.constant 1.000000e+00 : f32
    %240 = vector.broadcast %cst_105 : f32 to vector<2x32xf32>
    %241 = arith.addf %240, %239 : vector<2x32xf32>
    %242 = arith.divf %240, %241 : vector<2x32xf32>
    %243 = vector.extract_strided_slice %236 {offsets = [0, 32], sizes = [2, 32], strides = [1, 1]} : vector<2x128xf32> to vector<2x32xf32>
    %244 = arith.negf %243 : vector<2x32xf32>
    %245 = math.exp %244 : vector<2x32xf32>
    %cst_106 = arith.constant 1.000000e+00 : f32
    %246 = vector.broadcast %cst_106 : f32 to vector<2x32xf32>
    %247 = arith.addf %246, %245 : vector<2x32xf32>
    %248 = arith.divf %246, %247 : vector<2x32xf32>
    %249 = vector.extract_strided_slice %236 {offsets = [0, 64], sizes = [2, 32], strides = [1, 1]} : vector<2x128xf32> to vector<2x32xf32>
    %250 = math.tanh %249 : vector<2x32xf32>
    %251 = vector.extract_strided_slice %236 {offsets = [0, 96], sizes = [2, 32], strides = [1, 1]} : vector<2x128xf32> to vector<2x32xf32>
    %252 = arith.negf %251 : vector<2x32xf32>
    %253 = math.exp %252 : vector<2x32xf32>
    %cst_107 = arith.constant 1.000000e+00 : f32
    %254 = vector.broadcast %cst_107 : f32 to vector<2x32xf32>
    %255 = arith.addf %254, %253 : vector<2x32xf32>
    %256 = arith.divf %254, %255 : vector<2x32xf32>
    %257 = arith.mulf %248, %230 : vector<2x32xf32>
    %258 = arith.mulf %242, %250 : vector<2x32xf32>
    %259 = arith.addf %257, %258 : vector<2x32xf32>
    %260 = math.tanh %259 : vector<2x32xf32>
    %261 = arith.mulf %256, %260 : vector<2x32xf32>
    %c10_108 = arith.constant 10 : index
    %c0_109 = arith.constant 0 : index
    %262 = vector.load %arg12[%c10_108, %c0_109] : memref<16x32xf32, #tpu.memory_space<vmem>>, vector<2x32xf32>
    tpu.vector_store %arg12[%c10_108, %c0_109], %261 {strides = array<i32>} : memref<16x32xf32, #tpu.memory_space<vmem>>, vector<2x32xf32>,
    %263 = vector.extract_strided_slice %86 {offsets = [12, 0], sizes = [2, 128], strides = [1, 1]} : vector<16x128xf32> to vector<2x128xf32>
    %cst_110 = arith.constant dense<0.000000e+00> : vector<2x128xf32>
    %264 = tpu.matmul %261, %82, %cst_110 {dimension_numbers = #tpu.dot_dimension_numbers<[1], [0], [0], [1], [0, 0, 1, 1], [], []>} : vector<2x32xf32>, vector<32x128xf32>, vector<2x128xf32> -> vector<2x128xf32>
    %265 = arith.addf %263, %264 : vector<2x128xf32>
    %266 = vector.extract_strided_slice %265 {offsets = [0, 0], sizes = [2, 32], strides = [1, 1]} : vector<2x128xf32> to vector<2x32xf32>
    %267 = arith.negf %266 : vector<2x32xf32>
    %268 = math.exp %267 : vector<2x32xf32>
    %cst_111 = arith.constant 1.000000e+00 : f32
    %269 = vector.broadcast %cst_111 : f32 to vector<2x32xf32>
    %270 = arith.addf %269, %268 : vector<2x32xf32>
    %271 = arith.divf %269, %270 : vector<2x32xf32>
    %272 = vector.extract_strided_slice %265 {offsets = [0, 32], sizes = [2, 32], strides = [1, 1]} : vector<2x128xf32> to vector<2x32xf32>
    %273 = arith.negf %272 : vector<2x32xf32>
    %274 = math.exp %273 : vector<2x32xf32>
    %cst_112 = arith.constant 1.000000e+00 : f32
    %275 = vector.broadcast %cst_112 : f32 to vector<2x32xf32>
    %276 = arith.addf %275, %274 : vector<2x32xf32>
    %277 = arith.divf %275, %276 : vector<2x32xf32>
    %278 = vector.extract_strided_slice %265 {offsets = [0, 64], sizes = [2, 32], strides = [1, 1]} : vector<2x128xf32> to vector<2x32xf32>
    %279 = math.tanh %278 : vector<2x32xf32>
    %280 = vector.extract_strided_slice %265 {offsets = [0, 96], sizes = [2, 32], strides = [1, 1]} : vector<2x128xf32> to vector<2x32xf32>
    %281 = arith.negf %280 : vector<2x32xf32>
    %282 = math.exp %281 : vector<2x32xf32>
    %cst_113 = arith.constant 1.000000e+00 : f32
    %283 = vector.broadcast %cst_113 : f32 to vector<2x32xf32>
    %284 = arith.addf %283, %282 : vector<2x32xf32>
    %285 = arith.divf %283, %284 : vector<2x32xf32>
    %286 = arith.mulf %277, %259 : vector<2x32xf32>
    %287 = arith.mulf %271, %279 : vector<2x32xf32>
    %288 = arith.addf %286, %287 : vector<2x32xf32>
    %289 = math.tanh %288 : vector<2x32xf32>
    %290 = arith.mulf %285, %289 : vector<2x32xf32>
    %c12_114 = arith.constant 12 : index
    %c0_115 = arith.constant 0 : index
    %291 = vector.load %arg12[%c12_114, %c0_115] : memref<16x32xf32, #tpu.memory_space<vmem>>, vector<2x32xf32>
    tpu.vector_store %arg12[%c12_114, %c0_115], %290 {strides = array<i32>} : memref<16x32xf32, #tpu.memory_space<vmem>>, vector<2x32xf32>,
    %292 = vector.extract_strided_slice %86 {offsets = [14, 0], sizes = [2, 128], strides = [1, 1]} : vector<16x128xf32> to vector<2x128xf32>
    %cst_116 = arith.constant dense<0.000000e+00> : vector<2x128xf32>
    %293 = tpu.matmul %290, %82, %cst_116 {dimension_numbers = #tpu.dot_dimension_numbers<[1], [0], [0], [1], [0, 0, 1, 1], [], []>} : vector<2x32xf32>, vector<32x128xf32>, vector<2x128xf32> -> vector<2x128xf32>
    %294 = arith.addf %292, %293 : vector<2x128xf32>
    %295 = vector.extract_strided_slice %294 {offsets = [0, 0], sizes = [2, 32], strides = [1, 1]} : vector<2x128xf32> to vector<2x32xf32>
    %296 = arith.negf %295 : vector<2x32xf32>
    %297 = math.exp %296 : vector<2x32xf32>
    %cst_117 = arith.constant 1.000000e+00 : f32
    %298 = vector.broadcast %cst_117 : f32 to vector<2x32xf32>
    %299 = arith.addf %298, %297 : vector<2x32xf32>
    %300 = arith.divf %298, %299 : vector<2x32xf32>
    %301 = vector.extract_strided_slice %294 {offsets = [0, 32], sizes = [2, 32], strides = [1, 1]} : vector<2x128xf32> to vector<2x32xf32>
    %302 = arith.negf %301 : vector<2x32xf32>
    %303 = math.exp %302 : vector<2x32xf32>
    %cst_118 = arith.constant 1.000000e+00 : f32
    %304 = vector.broadcast %cst_118 : f32 to vector<2x32xf32>
    %305 = arith.addf %304, %303 : vector<2x32xf32>
    %306 = arith.divf %304, %305 : vector<2x32xf32>
    %307 = vector.extract_strided_slice %294 {offsets = [0, 64], sizes = [2, 32], strides = [1, 1]} : vector<2x128xf32> to vector<2x32xf32>
    %308 = math.tanh %307 : vector<2x32xf32>
    %309 = vector.extract_strided_slice %294 {offsets = [0, 96], sizes = [2, 32], strides = [1, 1]} : vector<2x128xf32> to vector<2x32xf32>
    %310 = arith.negf %309 : vector<2x32xf32>
    %311 = math.exp %310 : vector<2x32xf32>
    %cst_119 = arith.constant 1.000000e+00 : f32
    %312 = vector.broadcast %cst_119 : f32 to vector<2x32xf32>
    %313 = arith.addf %312, %311 : vector<2x32xf32>
    %314 = arith.divf %312, %313 : vector<2x32xf32>
    %315 = arith.mulf %306, %288 : vector<2x32xf32>
    %316 = arith.mulf %300, %308 : vector<2x32xf32>
    %317 = arith.addf %315, %316 : vector<2x32xf32>
    %318 = math.tanh %317 : vector<2x32xf32>
    %319 = arith.mulf %314, %318 : vector<2x32xf32>
    %c14_120 = arith.constant 14 : index
    %c0_121 = arith.constant 0 : index
    %320 = vector.load %arg12[%c14_120, %c0_121] : memref<16x32xf32, #tpu.memory_space<vmem>>, vector<2x32xf32>
    tpu.vector_store %arg12[%c14_120, %c0_121], %319 {strides = array<i32>} : memref<16x32xf32, #tpu.memory_space<vmem>>, vector<2x32xf32>,
    %c0_122 = arith.constant 0 : index
    %c0_123 = arith.constant 0 : index
    %c0_124 = arith.constant 0 : index
    %321 = vector.load %arg9[%c0_122, %c0_123, %c0_124] : memref<2x2x32xf32, #tpu.memory_space<vmem>>, vector<1x2x32xf32>
    %322 = vector.shape_cast %321 : vector<1x2x32xf32> to vector<2x32xf32>
    %323 = vector.shape_cast %319 : vector<2x32xf32> to vector<1x2x32xf32>
    tpu.vector_store %arg9[%c0_122, %c0_123, %c0_124], %323 {strides = array<i32>} : memref<2x2x32xf32, #tpu.memory_space<vmem>>, vector<1x2x32xf32>,
    %c0_125 = arith.constant 0 : index
    %c0_126 = arith.constant 0 : index
    %c0_127 = arith.constant 0 : index
    %324 = vector.load %arg10[%c0_125, %c0_126, %c0_127] : memref<2x2x32xf32, #tpu.memory_space<vmem>>, vector<1x2x32xf32>
    %325 = vector.shape_cast %324 : vector<1x2x32xf32> to vector<2x32xf32>
    %326 = vector.shape_cast %317 : vector<2x32xf32> to vector<1x2x32xf32>
    tpu.vector_store %arg10[%c0_125, %c0_126, %c0_127], %326 {strides = array<i32>} : memref<2x2x32xf32, #tpu.memory_space<vmem>>, vector<1x2x32xf32>,
    %c0_128 = arith.constant 0 : index
    %c0_129 = arith.constant 0 : index
    %327 = vector.load %arg12[%c0_128, %c0_129] : memref<16x32xf32, #tpu.memory_space<vmem>>, vector<16x32xf32>
    %c0_130 = arith.constant 0 : index
    %c0_131 = arith.constant 0 : index
    %328 = vector.load %arg6[%c0_130, %c0_131] : memref<32x128xf32, #tpu.memory_space<vmem>>, vector<32x128xf32>
    %c0_132 = arith.constant 0 : index
    %c0_133 = arith.constant 0 : index
    %329 = vector.load %arg7[%c0_132, %c0_133] : memref<32x128xf32, #tpu.memory_space<vmem>>, vector<32x128xf32>
    %c0_134 = arith.constant 0 : index
    %c0_135 = arith.constant 0 : index
    %330 = vector.load %arg8[%c0_134, %c0_135] : memref<1x128xf32, #tpu.memory_space<vmem>>, vector<1x128xf32>
    %cst_136 = arith.constant dense<0.000000e+00> : vector<16x128xf32>
    %331 = tpu.matmul %327, %328, %cst_136 {dimension_numbers = #tpu.dot_dimension_numbers<[1], [0], [0], [1], [0, 0, 1, 1], [], []>} : vector<16x32xf32>, vector<32x128xf32>, vector<16x128xf32> -> vector<16x128xf32>
    %332 = vector.broadcast %330 : vector<1x128xf32> to vector<16x128xf32>
    %333 = arith.addf %331, %332 : vector<16x128xf32>
    %cst_137 = arith.constant 0.000000e+00 : f32
    %334 = vector.broadcast %cst_137 : f32 to vector<2x32xf32>
    %cst_138 = arith.constant 0.000000e+00 : f32
    %335 = vector.broadcast %cst_138 : f32 to vector<2x32xf32>
    %336 = vector.extract_strided_slice %333 {offsets = [0, 0], sizes = [2, 128], strides = [1, 1]} : vector<16x128xf32> to vector<2x128xf32>
    %cst_139 = arith.constant dense<0.000000e+00> : vector<2x128xf32>
    %337 = tpu.matmul %334, %329, %cst_139 {dimension_numbers = #tpu.dot_dimension_numbers<[1], [0], [0], [1], [0, 0, 1, 1], [], []>} : vector<2x32xf32>, vector<32x128xf32>, vector<2x128xf32> -> vector<2x128xf32>
    %338 = arith.addf %336, %337 : vector<2x128xf32>
    %339 = vector.extract_strided_slice %338 {offsets = [0, 0], sizes = [2, 32], strides = [1, 1]} : vector<2x128xf32> to vector<2x32xf32>
    %340 = arith.negf %339 : vector<2x32xf32>
    %341 = math.exp %340 : vector<2x32xf32>
    %cst_140 = arith.constant 1.000000e+00 : f32
    %342 = vector.broadcast %cst_140 : f32 to vector<2x32xf32>
    %343 = arith.addf %342, %341 : vector<2x32xf32>
    %344 = arith.divf %342, %343 : vector<2x32xf32>
    %345 = vector.extract_strided_slice %338 {offsets = [0, 32], sizes = [2, 32], strides = [1, 1]} : vector<2x128xf32> to vector<2x32xf32>
    %346 = arith.negf %345 : vector<2x32xf32>
    %347 = math.exp %346 : vector<2x32xf32>
    %cst_141 = arith.constant 1.000000e+00 : f32
    %348 = vector.broadcast %cst_141 : f32 to vector<2x32xf32>
    %349 = arith.addf %348, %347 : vector<2x32xf32>
    %350 = arith.divf %348, %349 : vector<2x32xf32>
    %351 = vector.extract_strided_slice %338 {offsets = [0, 64], sizes = [2, 32], strides = [1, 1]} : vector<2x128xf32> to vector<2x32xf32>
    %352 = math.tanh %351 : vector<2x32xf32>
    %353 = vector.extract_strided_slice %338 {offsets = [0, 96], sizes = [2, 32], strides = [1, 1]} : vector<2x128xf32> to vector<2x32xf32>
    %354 = arith.negf %353 : vector<2x32xf32>
    %355 = math.exp %354 : vector<2x32xf32>
    %cst_142 = arith.constant 1.000000e+00 : f32
    %356 = vector.broadcast %cst_142 : f32 to vector<2x32xf32>
    %357 = arith.addf %356, %355 : vector<2x32xf32>
    %358 = arith.divf %356, %357 : vector<2x32xf32>
    %359 = arith.mulf %350, %335 : vector<2x32xf32>
    %360 = arith.mulf %344, %352 : vector<2x32xf32>
    %361 = arith.addf %359, %360 : vector<2x32xf32>
    %362 = math.tanh %361 : vector<2x32xf32>
    %363 = arith.mulf %358, %362 : vector<2x32xf32>
    %364 = vector.extract_strided_slice %333 {offsets = [2, 0], sizes = [2, 128], strides = [1, 1]} : vector<16x128xf32> to vector<2x128xf32>
    %cst_143 = arith.constant dense<0.000000e+00> : vector<2x128xf32>
    %365 = tpu.matmul %363, %329, %cst_143 {dimension_numbers = #tpu.dot_dimension_numbers<[1], [0], [0], [1], [0, 0, 1, 1], [], []>} : vector<2x32xf32>, vector<32x128xf32>, vector<2x128xf32> -> vector<2x128xf32>
    %366 = arith.addf %364, %365 : vector<2x128xf32>
    %367 = vector.extract_strided_slice %366 {offsets = [0, 0], sizes = [2, 32], strides = [1, 1]} : vector<2x128xf32> to vector<2x32xf32>
    %368 = arith.negf %367 : vector<2x32xf32>
    %369 = math.exp %368 : vector<2x32xf32>
    %cst_144 = arith.constant 1.000000e+00 : f32
    %370 = vector.broadcast %cst_144 : f32 to vector<2x32xf32>
    %371 = arith.addf %370, %369 : vector<2x32xf32>
    %372 = arith.divf %370, %371 : vector<2x32xf32>
    %373 = vector.extract_strided_slice %366 {offsets = [0, 32], sizes = [2, 32], strides = [1, 1]} : vector<2x128xf32> to vector<2x32xf32>
    %374 = arith.negf %373 : vector<2x32xf32>
    %375 = math.exp %374 : vector<2x32xf32>
    %cst_145 = arith.constant 1.000000e+00 : f32
    %376 = vector.broadcast %cst_145 : f32 to vector<2x32xf32>
    %377 = arith.addf %376, %375 : vector<2x32xf32>
    %378 = arith.divf %376, %377 : vector<2x32xf32>
    %379 = vector.extract_strided_slice %366 {offsets = [0, 64], sizes = [2, 32], strides = [1, 1]} : vector<2x128xf32> to vector<2x32xf32>
    %380 = math.tanh %379 : vector<2x32xf32>
    %381 = vector.extract_strided_slice %366 {offsets = [0, 96], sizes = [2, 32], strides = [1, 1]} : vector<2x128xf32> to vector<2x32xf32>
    %382 = arith.negf %381 : vector<2x32xf32>
    %383 = math.exp %382 : vector<2x32xf32>
    %cst_146 = arith.constant 1.000000e+00 : f32
    %384 = vector.broadcast %cst_146 : f32 to vector<2x32xf32>
    %385 = arith.addf %384, %383 : vector<2x32xf32>
    %386 = arith.divf %384, %385 : vector<2x32xf32>
    %387 = arith.mulf %378, %361 : vector<2x32xf32>
    %388 = arith.mulf %372, %380 : vector<2x32xf32>
    %389 = arith.addf %387, %388 : vector<2x32xf32>
    %390 = math.tanh %389 : vector<2x32xf32>
    %391 = arith.mulf %386, %390 : vector<2x32xf32>
    %392 = vector.extract_strided_slice %333 {offsets = [4, 0], sizes = [2, 128], strides = [1, 1]} : vector<16x128xf32> to vector<2x128xf32>
    %cst_147 = arith.constant dense<0.000000e+00> : vector<2x128xf32>
    %393 = tpu.matmul %391, %329, %cst_147 {dimension_numbers = #tpu.dot_dimension_numbers<[1], [0], [0], [1], [0, 0, 1, 1], [], []>} : vector<2x32xf32>, vector<32x128xf32>, vector<2x128xf32> -> vector<2x128xf32>
    %394 = arith.addf %392, %393 : vector<2x128xf32>
    %395 = vector.extract_strided_slice %394 {offsets = [0, 0], sizes = [2, 32], strides = [1, 1]} : vector<2x128xf32> to vector<2x32xf32>
    %396 = arith.negf %395 : vector<2x32xf32>
    %397 = math.exp %396 : vector<2x32xf32>
    %cst_148 = arith.constant 1.000000e+00 : f32
    %398 = vector.broadcast %cst_148 : f32 to vector<2x32xf32>
    %399 = arith.addf %398, %397 : vector<2x32xf32>
    %400 = arith.divf %398, %399 : vector<2x32xf32>
    %401 = vector.extract_strided_slice %394 {offsets = [0, 32], sizes = [2, 32], strides = [1, 1]} : vector<2x128xf32> to vector<2x32xf32>
    %402 = arith.negf %401 : vector<2x32xf32>
    %403 = math.exp %402 : vector<2x32xf32>
    %cst_149 = arith.constant 1.000000e+00 : f32
    %404 = vector.broadcast %cst_149 : f32 to vector<2x32xf32>
    %405 = arith.addf %404, %403 : vector<2x32xf32>
    %406 = arith.divf %404, %405 : vector<2x32xf32>
    %407 = vector.extract_strided_slice %394 {offsets = [0, 64], sizes = [2, 32], strides = [1, 1]} : vector<2x128xf32> to vector<2x32xf32>
    %408 = math.tanh %407 : vector<2x32xf32>
    %409 = vector.extract_strided_slice %394 {offsets = [0, 96], sizes = [2, 32], strides = [1, 1]} : vector<2x128xf32> to vector<2x32xf32>
    %410 = arith.negf %409 : vector<2x32xf32>
    %411 = math.exp %410 : vector<2x32xf32>
    %cst_150 = arith.constant 1.000000e+00 : f32
    %412 = vector.broadcast %cst_150 : f32 to vector<2x32xf32>
    %413 = arith.addf %412, %411 : vector<2x32xf32>
    %414 = arith.divf %412, %413 : vector<2x32xf32>
    %415 = arith.mulf %406, %389 : vector<2x32xf32>
    %416 = arith.mulf %400, %408 : vector<2x32xf32>
    %417 = arith.addf %415, %416 : vector<2x32xf32>
    %418 = math.tanh %417 : vector<2x32xf32>
    %419 = arith.mulf %414, %418 : vector<2x32xf32>
    %420 = vector.extract_strided_slice %333 {offsets = [6, 0], sizes = [2, 128], strides = [1, 1]} : vector<16x128xf32> to vector<2x128xf32>
    %cst_151 = arith.constant dense<0.000000e+00> : vector<2x128xf32>
    %421 = tpu.matmul %419, %329, %cst_151 {dimension_numbers = #tpu.dot_dimension_numbers<[1], [0], [0], [1], [0, 0, 1, 1], [], []>} : vector<2x32xf32>, vector<32x128xf32>, vector<2x128xf32> -> vector<2x128xf32>
    %422 = arith.addf %420, %421 : vector<2x128xf32>
    %423 = vector.extract_strided_slice %422 {offsets = [0, 0], sizes = [2, 32], strides = [1, 1]} : vector<2x128xf32> to vector<2x32xf32>
    %424 = arith.negf %423 : vector<2x32xf32>
    %425 = math.exp %424 : vector<2x32xf32>
    %cst_152 = arith.constant 1.000000e+00 : f32
    %426 = vector.broadcast %cst_152 : f32 to vector<2x32xf32>
    %427 = arith.addf %426, %425 : vector<2x32xf32>
    %428 = arith.divf %426, %427 : vector<2x32xf32>
    %429 = vector.extract_strided_slice %422 {offsets = [0, 32], sizes = [2, 32], strides = [1, 1]} : vector<2x128xf32> to vector<2x32xf32>
    %430 = arith.negf %429 : vector<2x32xf32>
    %431 = math.exp %430 : vector<2x32xf32>
    %cst_153 = arith.constant 1.000000e+00 : f32
    %432 = vector.broadcast %cst_153 : f32 to vector<2x32xf32>
    %433 = arith.addf %432, %431 : vector<2x32xf32>
    %434 = arith.divf %432, %433 : vector<2x32xf32>
    %435 = vector.extract_strided_slice %422 {offsets = [0, 64], sizes = [2, 32], strides = [1, 1]} : vector<2x128xf32> to vector<2x32xf32>
    %436 = math.tanh %435 : vector<2x32xf32>
    %437 = vector.extract_strided_slice %422 {offsets = [0, 96], sizes = [2, 32], strides = [1, 1]} : vector<2x128xf32> to vector<2x32xf32>
    %438 = arith.negf %437 : vector<2x32xf32>
    %439 = math.exp %438 : vector<2x32xf32>
    %cst_154 = arith.constant 1.000000e+00 : f32
    %440 = vector.broadcast %cst_154 : f32 to vector<2x32xf32>
    %441 = arith.addf %440, %439 : vector<2x32xf32>
    %442 = arith.divf %440, %441 : vector<2x32xf32>
    %443 = arith.mulf %434, %417 : vector<2x32xf32>
    %444 = arith.mulf %428, %436 : vector<2x32xf32>
    %445 = arith.addf %443, %444 : vector<2x32xf32>
    %446 = math.tanh %445 : vector<2x32xf32>
    %447 = arith.mulf %442, %446 : vector<2x32xf32>
    %448 = vector.extract_strided_slice %333 {offsets = [8, 0], sizes = [2, 128], strides = [1, 1]} : vector<16x128xf32> to vector<2x128xf32>
    %cst_155 = arith.constant dense<0.000000e+00> : vector<2x128xf32>
    %449 = tpu.matmul %447, %329, %cst_155 {dimension_numbers = #tpu.dot_dimension_numbers<[1], [0], [0], [1], [0, 0, 1, 1], [], []>} : vector<2x32xf32>, vector<32x128xf32>, vector<2x128xf32> -> vector<2x128xf32>
    %450 = arith.addf %448, %449 : vector<2x128xf32>
    %451 = vector.extract_strided_slice %450 {offsets = [0, 0], sizes = [2, 32], strides = [1, 1]} : vector<2x128xf32> to vector<2x32xf32>
    %452 = arith.negf %451 : vector<2x32xf32>
    %453 = math.exp %452 : vector<2x32xf32>
    %cst_156 = arith.constant 1.000000e+00 : f32
    %454 = vector.broadcast %cst_156 : f32 to vector<2x32xf32>
    %455 = arith.addf %454, %453 : vector<2x32xf32>
    %456 = arith.divf %454, %455 : vector<2x32xf32>
    %457 = vector.extract_strided_slice %450 {offsets = [0, 32], sizes = [2, 32], strides = [1, 1]} : vector<2x128xf32> to vector<2x32xf32>
    %458 = arith.negf %457 : vector<2x32xf32>
    %459 = math.exp %458 : vector<2x32xf32>
    %cst_157 = arith.constant 1.000000e+00 : f32
    %460 = vector.broadcast %cst_157 : f32 to vector<2x32xf32>
    %461 = arith.addf %460, %459 : vector<2x32xf32>
    %462 = arith.divf %460, %461 : vector<2x32xf32>
    %463 = vector.extract_strided_slice %450 {offsets = [0, 64], sizes = [2, 32], strides = [1, 1]} : vector<2x128xf32> to vector<2x32xf32>
    %464 = math.tanh %463 : vector<2x32xf32>
    %465 = vector.extract_strided_slice %450 {offsets = [0, 96], sizes = [2, 32], strides = [1, 1]} : vector<2x128xf32> to vector<2x32xf32>
    %466 = arith.negf %465 : vector<2x32xf32>
    %467 = math.exp %466 : vector<2x32xf32>
    %cst_158 = arith.constant 1.000000e+00 : f32
    %468 = vector.broadcast %cst_158 : f32 to vector<2x32xf32>
    %469 = arith.addf %468, %467 : vector<2x32xf32>
    %470 = arith.divf %468, %469 : vector<2x32xf32>
    %471 = arith.mulf %462, %445 : vector<2x32xf32>
    %472 = arith.mulf %456, %464 : vector<2x32xf32>
    %473 = arith.addf %471, %472 : vector<2x32xf32>
    %474 = math.tanh %473 : vector<2x32xf32>
    %475 = arith.mulf %470, %474 : vector<2x32xf32>
    %476 = vector.extract_strided_slice %333 {offsets = [10, 0], sizes = [2, 128], strides = [1, 1]} : vector<16x128xf32> to vector<2x128xf32>
    %cst_159 = arith.constant dense<0.000000e+00> : vector<2x128xf32>
    %477 = tpu.matmul %475, %329, %cst_159 {dimension_numbers = #tpu.dot_dimension_numbers<[1], [0], [0], [1], [0, 0, 1, 1], [], []>} : vector<2x32xf32>, vector<32x128xf32>, vector<2x128xf32> -> vector<2x128xf32>
    %478 = arith.addf %476, %477 : vector<2x128xf32>
    %479 = vector.extract_strided_slice %478 {offsets = [0, 0], sizes = [2, 32], strides = [1, 1]} : vector<2x128xf32> to vector<2x32xf32>
    %480 = arith.negf %479 : vector<2x32xf32>
    %481 = math.exp %480 : vector<2x32xf32>
    %cst_160 = arith.constant 1.000000e+00 : f32
    %482 = vector.broadcast %cst_160 : f32 to vector<2x32xf32>
    %483 = arith.addf %482, %481 : vector<2x32xf32>
    %484 = arith.divf %482, %483 : vector<2x32xf32>
    %485 = vector.extract_strided_slice %478 {offsets = [0, 32], sizes = [2, 32], strides = [1, 1]} : vector<2x128xf32> to vector<2x32xf32>
    %486 = arith.negf %485 : vector<2x32xf32>
    %487 = math.exp %486 : vector<2x32xf32>
    %cst_161 = arith.constant 1.000000e+00 : f32
    %488 = vector.broadcast %cst_161 : f32 to vector<2x32xf32>
    %489 = arith.addf %488, %487 : vector<2x32xf32>
    %490 = arith.divf %488, %489 : vector<2x32xf32>
    %491 = vector.extract_strided_slice %478 {offsets = [0, 64], sizes = [2, 32], strides = [1, 1]} : vector<2x128xf32> to vector<2x32xf32>
    %492 = math.tanh %491 : vector<2x32xf32>
    %493 = vector.extract_strided_slice %478 {offsets = [0, 96], sizes = [2, 32], strides = [1, 1]} : vector<2x128xf32> to vector<2x32xf32>
    %494 = arith.negf %493 : vector<2x32xf32>
    %495 = math.exp %494 : vector<2x32xf32>
    %cst_162 = arith.constant 1.000000e+00 : f32
    %496 = vector.broadcast %cst_162 : f32 to vector<2x32xf32>
    %497 = arith.addf %496, %495 : vector<2x32xf32>
    %498 = arith.divf %496, %497 : vector<2x32xf32>
    %499 = arith.mulf %490, %473 : vector<2x32xf32>
    %500 = arith.mulf %484, %492 : vector<2x32xf32>
    %501 = arith.addf %499, %500 : vector<2x32xf32>
    %502 = math.tanh %501 : vector<2x32xf32>
    %503 = arith.mulf %498, %502 : vector<2x32xf32>
    %504 = vector.extract_strided_slice %333 {offsets = [12, 0], sizes = [2, 128], strides = [1, 1]} : vector<16x128xf32> to vector<2x128xf32>
    %cst_163 = arith.constant dense<0.000000e+00> : vector<2x128xf32>
    %505 = tpu.matmul %503, %329, %cst_163 {dimension_numbers = #tpu.dot_dimension_numbers<[1], [0], [0], [1], [0, 0, 1, 1], [], []>} : vector<2x32xf32>, vector<32x128xf32>, vector<2x128xf32> -> vector<2x128xf32>
    %506 = arith.addf %504, %505 : vector<2x128xf32>
    %507 = vector.extract_strided_slice %506 {offsets = [0, 0], sizes = [2, 32], strides = [1, 1]} : vector<2x128xf32> to vector<2x32xf32>
    %508 = arith.negf %507 : vector<2x32xf32>
    %509 = math.exp %508 : vector<2x32xf32>
    %cst_164 = arith.constant 1.000000e+00 : f32
    %510 = vector.broadcast %cst_164 : f32 to vector<2x32xf32>
    %511 = arith.addf %510, %509 : vector<2x32xf32>
    %512 = arith.divf %510, %511 : vector<2x32xf32>
    %513 = vector.extract_strided_slice %506 {offsets = [0, 32], sizes = [2, 32], strides = [1, 1]} : vector<2x128xf32> to vector<2x32xf32>
    %514 = arith.negf %513 : vector<2x32xf32>
    %515 = math.exp %514 : vector<2x32xf32>
    %cst_165 = arith.constant 1.000000e+00 : f32
    %516 = vector.broadcast %cst_165 : f32 to vector<2x32xf32>
    %517 = arith.addf %516, %515 : vector<2x32xf32>
    %518 = arith.divf %516, %517 : vector<2x32xf32>
    %519 = vector.extract_strided_slice %506 {offsets = [0, 64], sizes = [2, 32], strides = [1, 1]} : vector<2x128xf32> to vector<2x32xf32>
    %520 = math.tanh %519 : vector<2x32xf32>
    %521 = vector.extract_strided_slice %506 {offsets = [0, 96], sizes = [2, 32], strides = [1, 1]} : vector<2x128xf32> to vector<2x32xf32>
    %522 = arith.negf %521 : vector<2x32xf32>
    %523 = math.exp %522 : vector<2x32xf32>
    %cst_166 = arith.constant 1.000000e+00 : f32
    %524 = vector.broadcast %cst_166 : f32 to vector<2x32xf32>
    %525 = arith.addf %524, %523 : vector<2x32xf32>
    %526 = arith.divf %524, %525 : vector<2x32xf32>
    %527 = arith.mulf %518, %501 : vector<2x32xf32>
    %528 = arith.mulf %512, %520 : vector<2x32xf32>
    %529 = arith.addf %527, %528 : vector<2x32xf32>
    %530 = math.tanh %529 : vector<2x32xf32>
    %531 = arith.mulf %526, %530 : vector<2x32xf32>
    %532 = vector.extract_strided_slice %333 {offsets = [14, 0], sizes = [2, 128], strides = [1, 1]} : vector<16x128xf32> to vector<2x128xf32>
    %cst_167 = arith.constant dense<0.000000e+00> : vector<2x128xf32>
    %533 = tpu.matmul %531, %329, %cst_167 {dimension_numbers = #tpu.dot_dimension_numbers<[1], [0], [0], [1], [0, 0, 1, 1], [], []>} : vector<2x32xf32>, vector<32x128xf32>, vector<2x128xf32> -> vector<2x128xf32>
    %534 = arith.addf %532, %533 : vector<2x128xf32>
    %535 = vector.extract_strided_slice %534 {offsets = [0, 0], sizes = [2, 32], strides = [1, 1]} : vector<2x128xf32> to vector<2x32xf32>
    %536 = arith.negf %535 : vector<2x32xf32>
    %537 = math.exp %536 : vector<2x32xf32>
    %cst_168 = arith.constant 1.000000e+00 : f32
    %538 = vector.broadcast %cst_168 : f32 to vector<2x32xf32>
    %539 = arith.addf %538, %537 : vector<2x32xf32>
    %540 = arith.divf %538, %539 : vector<2x32xf32>
    %541 = vector.extract_strided_slice %534 {offsets = [0, 32], sizes = [2, 32], strides = [1, 1]} : vector<2x128xf32> to vector<2x32xf32>
    %542 = arith.negf %541 : vector<2x32xf32>
    %543 = math.exp %542 : vector<2x32xf32>
    %cst_169 = arith.constant 1.000000e+00 : f32
    %544 = vector.broadcast %cst_169 : f32 to vector<2x32xf32>
    %545 = arith.addf %544, %543 : vector<2x32xf32>
    %546 = arith.divf %544, %545 : vector<2x32xf32>
    %547 = vector.extract_strided_slice %534 {offsets = [0, 64], sizes = [2, 32], strides = [1, 1]} : vector<2x128xf32> to vector<2x32xf32>
    %548 = math.tanh %547 : vector<2x32xf32>
    %549 = vector.extract_strided_slice %534 {offsets = [0, 96], sizes = [2, 32], strides = [1, 1]} : vector<2x128xf32> to vector<2x32xf32>
    %550 = arith.negf %549 : vector<2x32xf32>
    %551 = math.exp %550 : vector<2x32xf32>
    %cst_170 = arith.constant 1.000000e+00 : f32
    %552 = vector.broadcast %cst_170 : f32 to vector<2x32xf32>
    %553 = arith.addf %552, %551 : vector<2x32xf32>
    %554 = arith.divf %552, %553 : vector<2x32xf32>
    %555 = arith.mulf %546, %529 : vector<2x32xf32>
    %556 = arith.mulf %540, %548 : vector<2x32xf32>
    %557 = arith.addf %555, %556 : vector<2x32xf32>
    %558 = math.tanh %557 : vector<2x32xf32>
    %559 = arith.mulf %554, %558 : vector<2x32xf32>
    %c1_171 = arith.constant 1 : index
    %c0_172 = arith.constant 0 : index
    %c0_173 = arith.constant 0 : index
    %560 = vector.load %arg9[%c1_171, %c0_172, %c0_173] : memref<2x2x32xf32, #tpu.memory_space<vmem>>, vector<1x2x32xf32>
    %561 = vector.shape_cast %560 : vector<1x2x32xf32> to vector<2x32xf32>
    %562 = vector.shape_cast %559 : vector<2x32xf32> to vector<1x2x32xf32>
    tpu.vector_store %arg9[%c1_171, %c0_172, %c0_173], %562 {strides = array<i32>} : memref<2x2x32xf32, #tpu.memory_space<vmem>>, vector<1x2x32xf32>,
    %c1_174 = arith.constant 1 : index
    %c0_175 = arith.constant 0 : index
    %c0_176 = arith.constant 0 : index
    %563 = vector.load %arg10[%c1_174, %c0_175, %c0_176] : memref<2x2x32xf32, #tpu.memory_space<vmem>>, vector<1x2x32xf32>
    %564 = vector.shape_cast %563 : vector<1x2x32xf32> to vector<2x32xf32>
    %565 = vector.shape_cast %557 : vector<2x32xf32> to vector<1x2x32xf32>
    tpu.vector_store %arg10[%c1_174, %c0_175, %c0_176], %565 {strides = array<i32>} : memref<2x2x32xf32, #tpu.memory_space<vmem>>, vector<1x2x32xf32>,
    return
  }
  func.func @transform_0(%arg0: i32, %arg1: memref<16xi32, #tpu.memory_space<smem>>) -> (i32, i32, i32) {
    %c0_i32 = arith.constant 0 : i32
    %c0_i32_0 = arith.constant 0 : i32
    %c0_i32_1 = arith.constant 0 : i32
    %c0_i32_2 = arith.constant 0 : i32
    return %c0_i32, %c0_i32_0, %c0_i32_1 : i32, i32, i32
  }
  func.func @transform_1(%arg0: i32, %arg1: memref<16xi32, #tpu.memory_space<smem>>) -> (i32, i32) {
    %c0_i32 = arith.constant 0 : i32
    %c0_i32_0 = arith.constant 0 : i32
    %c0_i32_1 = arith.constant 0 : i32
    return %c0_i32, %c0_i32_0 : i32, i32
  }
  func.func @transform_2(%arg0: i32, %arg1: memref<16xi32, #tpu.memory_space<smem>>) -> (i32, i32) {
    %c0_i32 = arith.constant 0 : i32
    %c0_i32_0 = arith.constant 0 : i32
    %c0_i32_1 = arith.constant 0 : i32
    return %c0_i32, %c0_i32_0 : i32, i32
  }
  func.func @transform_3(%arg0: i32, %arg1: memref<16xi32, #tpu.memory_space<smem>>) -> (i32, i32) {
    %c0_i32 = arith.constant 0 : i32
    %c0_i32_0 = arith.constant 0 : i32
    %c0_i32_1 = arith.constant 0 : i32
    return %c0_i32, %c0_i32_0 : i32, i32
  }
  func.func @transform_4(%arg0: i32, %arg1: memref<16xi32, #tpu.memory_space<smem>>) -> (i32, i32) {
    %c0_i32 = arith.constant 0 : i32
    %c0_i32_0 = arith.constant 0 : i32
    %c0_i32_1 = arith.constant 0 : i32
    return %c0_i32, %c0_i32_0 : i32, i32
  }
  func.func @transform_5(%arg0: i32, %arg1: memref<16xi32, #tpu.memory_space<smem>>) -> (i32, i32) {
    %c0_i32 = arith.constant 0 : i32
    %c0_i32_0 = arith.constant 0 : i32
    %c0_i32_1 = arith.constant 0 : i32
    return %c0_i32, %c0_i32_0 : i32, i32
  }
  func.func @transform_6(%arg0: i32, %arg1: memref<16xi32, #tpu.memory_space<smem>>) -> (i32, i32) {
    %c0_i32 = arith.constant 0 : i32
    %c0_i32_0 = arith.constant 0 : i32
    %c0_i32_1 = arith.constant 0 : i32
    return %c0_i32, %c0_i32_0 : i32, i32
  }
  func.func @transform_7(%arg0: i32, %arg1: memref<16xi32, #tpu.memory_space<smem>>) -> (i32, i32, i32) {
    %c0_i32 = arith.constant 0 : i32
    %c0_i32_0 = arith.constant 0 : i32
    %c0_i32_1 = arith.constant 0 : i32
    %c0_i32_2 = arith.constant 0 : i32
    return %c0_i32, %c0_i32_0, %c0_i32_1 : i32, i32, i32
  }
  func.func @transform_8(%arg0: i32, %arg1: memref<16xi32, #tpu.memory_space<smem>>) -> (i32, i32, i32) {
    %c0_i32 = arith.constant 0 : i32
    %c0_i32_0 = arith.constant 0 : i32
    %c0_i32_1 = arith.constant 0 : i32
    %c0_i32_2 = arith.constant 0 : i32
    return %c0_i32, %c0_i32_0, %c0_i32_1 : i32, i32, i32
  }
}

</mosaic_0001>

<bundles_post_ra>
// kernel: encoder_forward.1
= control target key start
LH: loop header
LB: loop body
LE: loop exit
PB: predicated region body
PF: predicated region fallthrough
CT: control target
= control target key end

     0   :  { %s1682_s12 = smov [#allocation5]   ;;  %s2123_s0 = inlined_call_operand.vmem [shape: s32[16], index: 0, kind: input, shape index: {}]   ;;  %s2124_s1 = inlined_call_operand.vmem [shape: f32[64,1,32], index: 1, kind: input, shape index: {}]   ;;  %s2125_s2 = inlined_call_operand.vmem [shape: f32[32,128], index: 2, kind: input, shape index: {}]   ;;  %s2126_s3 = inlined_call_operand.vmem [shape: f32[32,128], index: 3, kind: input, shape index: {}]   ;;  %s2127_s4 = inlined_call_operand.vmem [shape: f32[1,128], index: 4, kind: input, shape index: {}]   ;;  %s2128_s5 = inlined_call_operand.vmem [shape: f32[32,128], index: 5, kind: input, shape index: {}]   ;;  %s2129_s6 = inlined_call_operand.hbm [shape: f32[32,128], index: 6, kind: input, shape index: {}]   ;;  %s2130_s7 = inlined_call_operand.vmem [shape: f32[1,128], index: 7, kind: input, shape index: {}]   ;;  %s2131_s8 = inlined_call_operand.hbm [shape: f32[2,2,32], index: 8, kind: output, shape index: {0}]   ;;  %s2132_s9 = inlined_call_operand.hbm [shape: f32[2,2,32], index: 9, kind: output, shape index: {1}]  }
   0x1   :  { %s16_s11 = sshll.u32 %s2123_s0, 4  ;;  %s17_s11 = int_to_ptr.vmem [resolvable:$true] %s16_s11 }
   0x2   :  { %19 = dma.vmem_to_smem %s17_s11, 16, %s1682_s12, [#allocation4] }
   0x3   :  { %1674 = dma.done.wait [#allocation4], 16 }
   0x4   :  { %1675 = vsyncadd [#allocation4], 4294967280 }
   0x5   :  { %22 = sfence }
   0x6   :  { %23 = vsyncpa [#allocation7], 0 }
   0x7   :  { %24 = vsyncpa [#allocation8], 0 }
   0x8   :  { %25 = vsyncpa [#allocation11], 0  ;;  %s40_s15 = sshll.u32 %s2129_s6, 4  ;;  %s1683_s16 = smov [#allocation6]   ;;  %s41_s15 = int_to_ptr.hbm [resolvable:$true] %s40_s15 }
   0x9   :  { %s42_s17 = sshll.u32 %s1683_s16, 4  ;;  %s1684_s18 = smov 128   ;;  %s43_s17 = int_to_ptr.vmem [resolvable:$true] %s42_s17 }
   0xa   :  { %s1685_s19 = smov 8  }
   0xb   :  { %48 = dma.hbm_to_vmem [thread:$0]  %s41_s15, 512, %s43_s17, [#allocation7], %s1684_s18, %s1684_s18, %s1685_s19  }
   0xc   :  { %1676 = dma.done.wait [#allocation7], 512  }
   0xd   :  { %1677 = vsyncadd [#allocation7], 4294966784  ;;  %s55_s0 = sld [smem:[#allocation5]]  ;;  %v125_v0 = vld [vmem:[%s2125_s2 + $0x18] sm:$0xff]  ;;  %v124_v1 = vld [vmem:[%s2125_s2 + $0x10] sm:$0xff]  ;;  %vm58_vm0 = vcmask 253952  }
   0xe   :  { %s1400_s20 = sld [smem:[#allocation5 + $0x1]]  ;;  %v1764_v2 = vld [vmem:[%s2126_s3 + $0x18] sm:$0xff]  ;;  %153 = vmatpush.msra.mxu0 %v125_v0  ;;  %v123_v3 = vld [vmem:[%s2125_s2 + $0x8] sm:$0xff]  ;;  %v1778_v4 = vld [vmem:[%s2126_s3 + $0x10] sm:$0xff]  ;;  %v1686_v16 = vmov 0.0   ;;  %vm134_vm1 = vcmask 261120  }
   0xf   :  { %s1401_s21 = sld [smem:[#allocation5 + $0x2]]  ;;  %179 = vmatpush.msra.mxu1 %v1764_v2  ;;  %v127_v5 = vld [vmem:[%s2126_s3 + $0x8] sm:$0xff]  ;;  %245 = vmatpush.msra.mxu2 %v1764_v2  ;;  %v122_v8 = vld [vmem:[%s2125_s2] sm:$0xff]  ;;  %vm229_vm6 = vcmask 254976   ;;  %s1366_s25 = sshll.u32 %s2132_s9, 4  ;;  %s1367_s25 = int_to_ptr.hbm [resolvable:$true] %s1366_s25 }
  0x10   :  { %s1749_s22 = sld [smem:[#allocation5 + $0x3]]  ;;  %320 = vmatpush.msra.mxu3 %v1764_v2  ;;  %154 = vmatpush.msra.mxu0 %v124_v1  ;;  %v126_v10 = vld [vmem:[%s2126_s3] sm:$0xff] }
  0x11   :  { %s1751_s23 = sld [smem:[#allocation5 + $0x4]]  ;;  %180 = vmatpush.msra.mxu1 %v1778_v4  ;;  %246 = vmatpush.msra.mxu2 %v1778_v4  ;;  %v1845_v18 = vld [vmem:[%s2127_s4] ss:$0 sm:$0xff]  ;;  %s1688_s4 = smov 32  }
  0x12   :  { %s1753_s24 = sld [smem:[#allocation5 + $0x5]]  ;;  %321 = vmatpush.msra.mxu3 %v1778_v4  ;;  %155 = vmatpush.msra.mxu0 %v123_v3 }
  0x13   :  { %s56_s11 = scalar_lea.vmem %s2124_s1, %s55_s0  ;;  %s1769_s12 = sld [smem:[#allocation5 + $0x6]]  ;;  %181 = vmatpush.msra.mxu1 %v127_v5  ;;  %247 = vmatpush.msra.mxu2 %v127_v5 }
  0x14   :  { %s61_s19 = scalar_lea.vmem %s2124_s1, %s1400_s20  ;;  %s1783_s0 = sld [smem:[#allocation5 + $0x7]]  ;;  %v57_v6 = vld [vmem:[%s56_s11] sm:$0x1]  ;;  %322 = vmatpush.msra.mxu3 %v127_v5  ;;  %156 = vmatpush.msra.mxu0 %v122_v8 }
  0x15   :  { %v62_v7 = vld [vmem:[%s61_s19] sm:$0x1]  ;;  %s65_s28 = scalar_lea.vmem %s2124_s1, %s1401_s21  ;;  %59 = vst.msk [vmem:[#allocation2] sm:$0x1] %vm58_vm0, %v57_v6  ;;  %182 = vmatpush.msra.mxu1 %v126_v10  ;;  %248 = vmatpush.msra.mxu2 %v126_v10  ;;  %s1407_s26 = sld [smem:[#allocation5 + $0x8]] }
  0x16   :  { %v66_v9 = vld [vmem:[%s65_s28] sm:$0x1]  ;;  %s69_s21 = scalar_lea.vmem %s2124_s1, %s1749_s22  ;;  %63 = vst.msk [vmem:[#allocation2 + $0x1] sm:$0x1] %vm58_vm0, %v62_v7  ;;  %183 = vmatmul.f32.vlgmr.msra.gmra.mxu1 %v1686_v16  ;;  %323 = vmatpush.msra.mxu3 %v126_v10  ;;  %s1408_s27 = sld [smem:[#allocation5 + $0x9]] }
  0x17   :  { %v70_v11 = vld [vmem:[%s69_s21] sm:$0x1]  ;;  %s73_s16 = scalar_lea.vmem %s2124_s1, %s1751_s23  ;;  %67 = vst.msk [vmem:[#allocation2 + $0x2] sm:$0x1] %vm58_vm0, %v66_v9  ;;  %395 = vmatpush.msrb.mxu1 %v1764_v2  ;;  %470 = vmatpush.msrb.mxu2 %v1764_v2  ;;  %s1409_s28 = sld [smem:[#allocation5 + $0xa]] }
  0x18   :  { %v74_v12 = vld [vmem:[%s73_s16] sm:$0x1]  ;;  %s77_s3 = scalar_lea.vmem %s2124_s1, %s1753_s24  ;;  %71 = vst.msk [vmem:[#allocation2 + $0x3] sm:$0x1] %vm58_vm0, %v70_v11  ;;  %538 = vmatpush.msrb.mxu3 %v1764_v2  ;;  %612 = vmatpush.msrb.mxu0 %v1764_v2  ;;  %s1410_s20 = sld [smem:[#allocation5 + $0xb]] }
  0x19   :  { %v78_v13 = vld [vmem:[%s77_s3] sm:$0x1]  ;;  %s81_s23 = scalar_lea.vmem %s2124_s1, %s1769_s12  ;;  %75 = vst.msk [vmem:[#allocation2 + $0x4] sm:$0x1] %vm58_vm0, %v74_v12  ;;  %396 = vmatpush.msrb.mxu1 %v1778_v4  ;;  %471 = vmatpush.msrb.mxu2 %v1778_v4  ;;  %s1411_s29 = sld [smem:[#allocation5 + $0xc]] }
  0x1a   :  { %v82_v14 = vld [vmem:[%s81_s23] sm:$0x1]  ;;  %s85_s6 = scalar_lea.vmem %s2124_s1, %s1783_s0  ;;  %79 = vst.msk [vmem:[#allocation2 + $0x5] sm:$0x1] %vm58_vm0, %v78_v13  ;;  %539 = vmatpush.msrb.mxu3 %v1778_v4  ;;  %613 = vmatpush.msrb.mxu0 %v1778_v4  ;;  %s1687_s0 = smov 64  }
  0x1b   :  { %v86_v15 = vld [vmem:[%s85_s6] sm:$0x1]  ;;  %83 = vst.msk [vmem:[#allocation2 + $0x6] sm:$0x1] %vm58_vm0, %v82_v14  ;;  %397 = vmatpush.msrb.mxu1 %v127_v5  ;;  %472 = vmatpush.msrb.mxu2 %v127_v5  ;;  %s1412_s30 = sld [smem:[#allocation5 + $0xd]]  ;;  %s89_s14 = scalar_lea.vmem %s2124_s1, %s1407_s26 }
  0x1c   :  { %87 = vst.msk [vmem:[#allocation2 + $0x7] sm:$0x1] %vm58_vm0, %v86_v15  ;;  %540 = vmatpush.msrb.mxu3 %v127_v5  ;;  %614 = vmatpush.msrb.mxu0 %v127_v5  ;;  %s1413_s10 = sld [smem:[#allocation5 + $0xe]]  ;;  %s93_s2 = scalar_lea.vmem %s2124_s1, %s1408_s27 }
  0x1d   :  { %398 = vmatpush.msrb.mxu1 %v126_v10  ;;  %473 = vmatpush.msrb.mxu2 %v126_v10  ;;  %s1414_s21 = sld [smem:[#allocation5 + $0xf]]  ;;  %s97_s17 = scalar_lea.vmem %s2124_s1, %s1409_s28 }
  0x1e   :  { %541 = vmatpush.msrb.mxu3 %v126_v10  ;;  %615 = vmatpush.msrb.mxu0 %v126_v10  ;;  %s101_s19 = scalar_lea.vmem %s2124_s1, %s1410_s20  ;;  %s1691_s6 = smov 2  }
  0x1f   :  { %686 = vmatpush.msra.mxu1 %v1764_v2  ;;  %s105_s24 = scalar_lea.vmem %s2124_s1, %s1411_s29 }
  0x21   :  { %687 = vmatpush.msra.mxu1 %v1778_v4  ;;  %s109_s11 = scalar_lea.vmem %s2124_s1, %s1412_s30 }
  0x22   :  { %s113_s13 = scalar_lea.vmem %s2124_s1, %s1413_s10 }
  0x23   :  { %v120_v17 = vld [vmem:[#allocation2] sm:$0xff]  ;;  %688 = vmatpush.msra.mxu1 %v127_v5  ;;  %s117_s29 = scalar_lea.vmem %s2124_s1, %s1414_s21 }
  0x24   :  { %1415 = vmatmul.msk.f32.vlgmr.msra.gmra.mxu0 %vm134_vm1, %v120_v17 }
  0x25   :  { %689 = vmatpush.msra.mxu1 %v126_v10 }
  0x93   :  { %v184_v20 = vpop.f32.mrf.mxu1 }
  0xa1   :  { %v158_v19 = vpop.f32.mrf.mxu0 }
  0xa2   :  { %v1848_v21 = vadd.f32 %v1845_v18, %v158_v19 }
  0xa4   :  { %v187_v22 = vadd.f32 %v184_v20, %v1848_v21 }
  0xa6   :  { %1462 = vtanh.f32 %v187_v22  ;;  %v1417_v24 = vmul.f32 -1.442695, %v187_v22 }
  0xa8   :  { %1464 = vpow2.f32 %v1417_v24 }
  0xac   :  { %v1463_v23 = vpop.eup %1462 }
  0xad   :  { %210 = vrot.lane.b32.xlu0 %v1463_v23, %s1687_s0 }
  0xae   :  { %v1465_v25 = vpop.eup %1464 }
  0xaf   :  { %v191_v26 = vadd.f32 1.0, %v1465_v25 }
  0xb1   :  { %1466 = vrcp.f32 %v191_v26  ;;  %v203_v32 = vand.u32 2147483648, %v191_v26  ;;  %vm197_vm3 = vweird.f32 %v191_v26  ;;  %v201_v33 = vand.u32 2147483647, %v191_v26 }
  0xb3   :  { %v204_v35 = vor.u32 1.1754944e-38, %v203_v32  ;;  %vm202_vm5 = vcmp.eq.f32.partialorder %v201_v33, 8.507059e+37 }
  0xb7   :  { %v1467_v27 = vpop.eup %1466 }
  0xb8   :  { %v193_v28 = vmul.f32 %v1467_v27, %v191_v26  ;;  %vm198_vm2 = vweird.f32 %v1467_v27 }
  0xb9   :  { %vm199_vm4 = vmor %vm197_vm3, %vm198_vm2 }
  0xba   :  { %v194_v29 = vsub.f32 1.0, %v193_v28 }
  0xbc   :  { %v195_v30 = vmul.f32 %v1467_v27, %v194_v29 }
  0xbe   :  { %v196_v31 = vadd.f32 %v1467_v27, %v195_v30 }
  0xc0   :  { %v200_v34 = vsel %vm199_vm4, %v1467_v27, %v196_v31 }
  0xc1   :  { %v205_v37 = vsel %vm202_vm5, %v204_v35, %v200_v34 }
  0xc2   :  { %v208_v39 = vmul.f32 0.0, %v205_v37 }
 0x11f   :  { %v211_v36 = vpop.permute.xlu0 %210 }
 0x120   :  { %v213_v38 = vmul.f32 %v211_v36, %v205_v37 }
 0x122   :  { %215 = vrot.lane.b32.xlu0 %v213_v38, %s1688_s4 }
 0x194   :  { %v216_v40 = vpop.permute.xlu0 %215 }
 0x195   :  { %v218_v41 = vadd.f32 %v216_v40, %v208_v39 }
 0x197   :  { %1468 = vtanh.f32 %v218_v41  ;;  %v278_v1 = vrot.slane %v218_v41, 6 }
 0x19d   :  { %v1469_v42 = vpop.eup %1468 }
 0x19e   :  { %221 = vrot.lane.b32.xlu1 %v1469_v42, %s1687_s0 }
 0x210   :  { %v222_v43 = vpop.permute.xlu1 %221 }
 0x211   :  { %v224_v44 = vmul.f32 %v222_v43, %v205_v37 }
 0x213   :  { %226 = vrot.lane.b32.xlu1 %v224_v44, %s1688_s4 }
 0x285   :  { %v227_v45 = vpop.permute.xlu1 %226 }
 0x286   :  { %230 = vst.msk [vmem:[#allocation3] sm:$0x3] %vm229_vm6, %v227_v45  ;;  %1418 = vmatmul.msk.f32.vlgmr.msra.gmra.mxu2 %vm134_vm1, %v227_v45 }
 0x309   :  { %v250_v46 = vpop.f32.mrf.mxu2 }
 0x30a   :  { %v254_v47 = vrot.slane %v250_v46, 6 }
 0x30c   :  { %v256_v48 = vadd.f32 %v254_v47, %v1848_v21 }
 0x30e   :  { %1470 = vtanh.f32 %v256_v48  ;;  %v1419_v50 = vmul.f32 -1.442695, %v256_v48 }
 0x310   :  { %1472 = vpow2.f32 %v1419_v50 }
 0x314   :  { %v1471_v49 = vpop.eup %1470 }
 0x315   :  { %282 = vrot.lane.b32.xlu2 %v1471_v49, %s1687_s0 }
 0x316   :  { %v1473_v51 = vpop.eup %1472 }
 0x317   :  { %v260_v52 = vadd.f32 1.0, %v1473_v51 }
 0x319   :  { %1474 = vrcp.f32 %v260_v52  ;;  %v272_v58 = vand.u32 2147483648, %v260_v52  ;;  %vm266_vm8 = vweird.f32 %v260_v52  ;;  %v270_v59 = vand.u32 2147483647, %v260_v52 }
 0x31b   :  { %v273_v61 = vor.u32 1.1754944e-38, %v272_v58  ;;  %vm271_vm10 = vcmp.eq.f32.partialorder %v270_v59, 8.507059e+37 }
 0x31f   :  { %v1475_v53 = vpop.eup %1474 }
 0x320   :  { %v262_v54 = vmul.f32 %v1475_v53, %v260_v52  ;;  %vm267_vm7 = vweird.f32 %v1475_v53 }
 0x321   :  { %vm268_vm9 = vmor %vm266_vm8, %vm267_vm7 }
 0x322   :  { %v263_v55 = vsub.f32 1.0, %v262_v54 }
 0x324   :  { %v264_v56 = vmul.f32 %v1475_v53, %v263_v55 }
 0x326   :  { %v265_v57 = vadd.f32 %v1475_v53, %v264_v56 }
 0x328   :  { %v269_v60 = vsel %vm268_vm9, %v1475_v53, %v265_v57  ;;  %vm301_vm9 = vcmask 257026  }
 0x329   :  { %v274_v63 = vsel %vm271_vm10, %v273_v61, %v269_v60  ;;  %vm376_vm10 = vcmask 259076  }
 0x32a   :  { %v280_v2 = vmul.f32 %v278_v1, %v274_v63 }
 0x36f   :  { %v283_v62 = vpop.permute.xlu2 %282 }
 0x370   :  { %v285_v0 = vmul.f32 %v283_v62, %v274_v63 }
 0x372   :  { %287 = vrot.lane.b32.xlu2 %v285_v0, %s1688_s4 }
 0x3cc   :  { %v288_v3 = vpop.permute.xlu2 %287 }
 0x3cd   :  { %v290_v4 = vadd.f32 %v288_v3, %v280_v2  ;;  %v90_v3 = vld [vmem:[%s89_s14] sm:$0x1] }
 0x3ce   :  { %91 = vst.msk [vmem:[#allocation2 + $0x8] sm:$0x1] %vm58_vm0, %v90_v3 }
 0x3cf   :  { %1476 = vtanh.f32 %v290_v4  ;;  %v353_v32 = vrot.slane %v290_v4, 6  ;;  %v94_v4 = vld [vmem:[%s93_s2] sm:$0x1] }
 0x3d0   :  { %95 = vst.msk [vmem:[#allocation2 + $0x9] sm:$0x1] %vm58_vm0, %v94_v4 }
 0x3d5   :  { %v1477_v5 = vpop.eup %1476 }
 0x3d6   :  { %293 = vrot.lane.b32.xlu0 %v1477_v5, %s1687_s0  ;;  %v98_v5 = vld [vmem:[%s97_s17] sm:$0x1]  ;;  %s1690_s17 = smov [#allocation10]  }
 0x3d7   :  { %99 = vst.msk [vmem:[#allocation2 + $0xa] sm:$0x1] %vm58_vm0, %v98_v5  ;;  %s1364_s18 = sshll.u32 %s1690_s17, 4  ;;  %s1365_s18 = int_to_ptr.vmem [resolvable:$true] %s1364_s18 }
 0x448   :  { %v294_v6 = vpop.permute.xlu0 %293 }
 0x449   :  { %v1861_v7 = vmul.f32 %v294_v6, %v274_v63  ;;  %v102_v6 = vld [vmem:[%s101_s19] sm:$0x1] }
 0x44a   :  { %103 = vst.msk [vmem:[#allocation2 + $0xb] sm:$0x1] %vm58_vm0, %v102_v6 }
 0x44b   :  { %v303_v8 = vrot.slane %v1861_v7, 2 }
 0x44d   :  { %304 = vrot.lane.b32.xlu1 %v303_v8, %s1688_s4  ;;  %v106_v8 = vld [vmem:[%s105_s24] sm:$0x1] }
 0x44e   :  { %107 = vst.msk [vmem:[#allocation2 + $0xc] sm:$0x1] %vm58_vm0, %v106_v8 }
 0x4bf   :  { %v305_v9 = vpop.permute.xlu1 %304 }
 0x4c0   :  { %1420 = vmatmul.msk.f32.vlgmr.msra.gmra.mxu3 %vm134_vm1, %v305_v9  ;;  %v110_v9 = vld [vmem:[%s109_s11] sm:$0x1]  ;;  %s1353_s11 = sshll.u32 %s2131_s8, 4  ;;  %s1354_s11 = int_to_ptr.hbm [resolvable:$true] %s1353_s11 }
 0x4c1   :  { %111 = vst.msk [vmem:[#allocation2 + $0xd] sm:$0x1] %vm58_vm0, %v110_v9 }
 0x543   :  { %v325_v10 = vpop.f32.mrf.mxu3 }
 0x544   :  { %v329_v11 = vrot.slane %v325_v10, 4  ;;  %v114_v10 = vld [vmem:[%s113_s13] sm:$0x1] }
 0x545   :  { %115 = vst.msk [vmem:[#allocation2 + $0xe] sm:$0x1] %vm58_vm0, %v114_v10 }
 0x546   :  { %v331_v12 = vadd.f32 %v329_v11, %v1848_v21  ;;  %v118_v11 = vld [vmem:[%s117_s29] sm:$0x1] }
 0x547   :  { %119 = vst.msk [vmem:[#allocation2 + $0xf] sm:$0x1] %vm58_vm0, %v118_v11 }
 0x548   :  { %1478 = vtanh.f32 %v331_v12  ;;  %v1421_v14 = vmul.f32 -1.442695, %v331_v12 }
 0x54a   :  { %1480 = vpow2.f32 %v1421_v14 }
 0x54e   :  { %v1479_v13 = vpop.eup %1478  ;;  %v121_v12 = vld [vmem:[#allocation2 + $0x8] sm:$0xff] }
 0x54f   :  { %357 = vrot.lane.b32.xlu2 %v1479_v13, %s1687_s0  ;;  %1416 = vmatmul.msk.f32.gmra.mxu0 %vm134_vm1, %v121_v12 }
 0x550   :  { %v1481_v15 = vpop.eup %1480 }
 0x551   :  { %v335_v17 = vadd.f32 1.0, %v1481_v15 }
 0x553   :  { %1482 = vrcp.f32 %v335_v17  ;;  %v347_v25 = vand.u32 2147483648, %v335_v17  ;;  %vm341_vm12 = vweird.f32 %v335_v17  ;;  %v345_v26 = vand.u32 2147483647, %v335_v17 }
 0x555   :  { %v348_v28 = vor.u32 1.1754944e-38, %v347_v25  ;;  %vm346_vm14 = vcmp.eq.f32.partialorder %v345_v26, 8.507059e+37 }
 0x559   :  { %v1483_v19 = vpop.eup %1482 }
 0x55a   :  { %v337_v20 = vmul.f32 %v1483_v19, %v335_v17  ;;  %vm342_vm11 = vweird.f32 %v1483_v19 }
 0x55b   :  { %vm343_vm13 = vmor %vm341_vm12, %vm342_vm11  ;;  %vm451_vm11 = vcmask 261126  }
 0x55c   :  { %v338_v22 = vsub.f32 1.0, %v337_v20 }
 0x55e   :  { %v339_v23 = vmul.f32 %v1483_v19, %v338_v22 }
 0x560   :  { %v340_v24 = vadd.f32 %v1483_v19, %v339_v23 }
 0x562   :  { %v344_v27 = vsel %vm343_vm13, %v1483_v19, %v340_v24 }
 0x563   :  { %v349_v30 = vsel %vm346_vm14, %v348_v28, %v344_v27 }
 0x564   :  { %v355_v33 = vmul.f32 %v353_v32, %v349_v30 }
 0x5a9   :  { %v358_v29 = vpop.permute.xlu2 %357 }
 0x5aa   :  { %v360_v31 = vmul.f32 %v358_v29, %v349_v30 }
 0x5ac   :  { %362 = vrot.lane.b32.xlu0 %v360_v31, %s1688_s4 }
 0x5cc   :  { %v161_v14 = vpop.f32.mrf.mxu0 }
 0x5cd   :  { %v1921_v15 = vadd.f32 %v1845_v18, %v161_v14 }
 0x61e   :  { %v363_v34 = vpop.permute.xlu0 %362 }
 0x61f   :  { %v365_v35 = vadd.f32 %v363_v34, %v355_v33 }
 0x621   :  { %1484 = vtanh.f32 %v365_v35  ;;  %v428_v59 = vrot.slane %v365_v35, 6 }
 0x627   :  { %v1485_v36 = vpop.eup %1484 }
 0x628   :  { %368 = vrot.lane.b32.xlu1 %v1485_v36, %s1687_s0 }
 0x69a   :  { %v369_v37 = vpop.permute.xlu1 %368 }
 0x69b   :  { %v1870_v38 = vmul.f32 %v369_v37, %v349_v30 }
 0x69d   :  { %v378_v39 = vrot.slane %v1870_v38, 4 }
 0x69f   :  { %379 = vrot.lane.b32.xlu2 %v378_v39, %s1688_s4 }
 0x6f9   :  { %v380_v40 = vpop.permute.xlu2 %379 }
 0x6fa   :  { %1422 = vmatmul.msk.f32.vlgmr.msrb.gmra.mxu1 %vm134_vm1, %v380_v40 }
 0x777   :  { %v400_v41 = vpop.f32.mrf.mxu1 }
 0x778   :  { %v404_v42 = vrot.slane %v400_v41, 2 }
 0x77a   :  { %v406_v43 = vadd.f32 %v404_v42, %v1848_v21 }
 0x77c   :  { %1486 = vtanh.f32 %v406_v43  ;;  %v1423_v45 = vmul.f32 -1.442695, %v406_v43 }
 0x77e   :  { %1488 = vpow2.f32 %v1423_v45  ;;  %v754_v45 = vld [vmem:[%s2128_s5 + $0x18] sm:$0xff] }
 0x77f   :  { %781 = vmatpush.msra.mxu2 %v754_v45 }
 0x782   :  { %v1487_v44 = vpop.eup %1486 }
 0x783   :  { %432 = vrot.lane.b32.xlu0 %v1487_v44, %s1687_s0 }
 0x784   :  { %v1489_v46 = vpop.eup %1488 }
 0x785   :  { %v410_v47 = vadd.f32 1.0, %v1489_v46  ;;  %v753_v46 = vld [vmem:[%s2128_s5 + $0x10] sm:$0xff] }
 0x786   :  { %782 = vmatpush.msra.mxu2 %v753_v46 }
 0x787   :  { %1490 = vrcp.f32 %v410_v47  ;;  %v422_v53 = vand.u32 2147483648, %v410_v47  ;;  %vm416_vm2 = vweird.f32 %v410_v47  ;;  %v420_v54 = vand.u32 2147483647, %v410_v47 }
 0x789   :  { %v423_v55 = vor.u32 1.1754944e-38, %v422_v53  ;;  %vm421_vm4 = vcmp.eq.f32.partialorder %v420_v54, 8.507059e+37 }
 0x78d   :  { %v1491_v48 = vpop.eup %1490 }
 0x78e   :  { %v412_v49 = vmul.f32 %v1491_v48, %v410_v47  ;;  %vm417_vm15 = vweird.f32 %v1491_v48  ;;  %v1949_v47 = vld [vmem:[#allocation6 + $0x10] sm:$0xff] }
 0x78f   :  { %vm418_vm3 = vmor %vm416_vm2, %vm417_vm15 }
 0x790   :  { %v413_v50 = vsub.f32 1.0, %v412_v49  ;;  %v1954_v49 = vld [vmem:[#allocation6 + $0x8] sm:$0xff] }
 0x792   :  { %v414_v51 = vmul.f32 %v1491_v48, %v413_v50  ;;  %v751_v50 = vld [vmem:[%s2128_s5] sm:$0xff] }
 0x794   :  { %v415_v52 = vadd.f32 %v1491_v48, %v414_v51  ;;  %v1967_v51 = vld [vmem:[#allocation6] sm:$0xff] }
 0x796   :  { %v419_v21 = vsel %vm418_vm3, %v1491_v48, %v415_v52  ;;  %v752_v48 = vld [vmem:[%s2128_s5 + $0x8] sm:$0xff] }
 0x797   :  { %v424_v57 = vsel %vm421_vm4, %v423_v55, %v419_v21  ;;  %783 = vmatpush.msra.mxu2 %v752_v48 }
 0x798   :  { %v430_v60 = vmul.f32 %v428_v59, %v424_v57 }
 0x799   :  { %784 = vmatpush.msra.mxu2 %v751_v50 }
 0x7f5   :  { %v433_v56 = vpop.permute.xlu0 %432 }
 0x7f6   :  { %v435_v58 = vmul.f32 %v433_v56, %v424_v57 }
 0x7f8   :  { %437 = vrot.lane.b32.xlu1 %v435_v58, %s1688_s4 }
 0x86a   :  { %v438_v61 = vpop.permute.xlu1 %437 }
 0x86b   :  { %v1878_v62 = vadd.f32 %v438_v61, %v430_v60 }
 0x86d   :  { %1492 = vtanh.f32 %v1878_v62  ;;  %v500_v36 = vrot.slane %v1878_v62, 6 }
 0x873   :  { %v1493_v63 = vpop.eup %1492 }
 0x874   :  { %443 = vrot.lane.b32.xlu2 %v1493_v63, %s1687_s0 }
 0x8ce   :  { %v444_v0 = vpop.permute.xlu2 %443 }
 0x8cf   :  { %v1882_v1 = vmul.f32 %v444_v0, %v424_v57 }
 0x8d1   :  { %v453_v2 = vrot.slane %v1882_v1, 6 }
 0x8d3   :  { %454 = vrot.lane.b32.xlu0 %v453_v2, %s1688_s4 }
 0x945   :  { %v455_v13 = vpop.permute.xlu0 %454 }
 0x946   :  { %1424 = vmatmul.msk.f32.vlgmr.msrb.gmra.mxu2 %vm134_vm1, %v455_v13 }
 0x9c9   :  { %v475_v17 = vpop.f32.mrf.mxu2 }
 0x9ca   :  { %v478_v19 = vadd.f32 %v475_v17, %v1921_v15 }
 0x9cc   :  { %1494 = vtanh.f32 %v478_v19  ;;  %v1425_v22 = vmul.f32 -1.442695, %v478_v19 }
 0x9ce   :  { %1496 = vpow2.f32 %v1425_v22 }
 0x9d2   :  { %v1495_v20 = vpop.eup %1494 }
 0x9d3   :  { %504 = vrot.lane.b32.xlu1 %v1495_v20, %s1687_s0 }
 0x9d4   :  { %v1497_v23 = vpop.eup %1496 }
 0x9d5   :  { %v482_v24 = vadd.f32 1.0, %v1497_v23 }
 0x9d7   :  { %1498 = vrcp.f32 %v482_v24  ;;  %v494_v18 = vand.u32 2147483648, %v482_v24  ;;  %vm488_vm5 = vweird.f32 %v482_v24  ;;  %v492_v30 = vand.u32 2147483647, %v482_v24 }
 0x9d9   :  { %v495_v32 = vor.u32 1.1754944e-38, %v494_v18  ;;  %vm493_vm8 = vcmp.eq.f32.partialorder %v492_v30, 8.507059e+37 }
 0x9dd   :  { %v1499_v25 = vpop.eup %1498 }
 0x9de   :  { %v484_v26 = vmul.f32 %v1499_v25, %v482_v24  ;;  %vm489_vm0 = vweird.f32 %v1499_v25 }
 0x9df   :  { %vm490_vm7 = vmor %vm488_vm5, %vm489_vm0 }
 0x9e0   :  { %v485_v27 = vsub.f32 1.0, %v484_v26 }
 0x9e2   :  { %v486_v28 = vmul.f32 %v1499_v25, %v485_v27 }
 0x9e4   :  { %v487_v29 = vadd.f32 %v1499_v25, %v486_v28 }
 0x9e6   :  { %v491_v31 = vsel %vm490_vm7, %v1499_v25, %v487_v29 }
 0x9e7   :  { %v496_v34 = vsel %vm493_vm8, %v495_v32, %v491_v31 }
 0x9e8   :  { %v502_v37 = vmul.f32 %v500_v36, %v496_v34 }
 0xa45   :  { %v505_v33 = vpop.permute.xlu1 %504 }
 0xa46   :  { %v507_v35 = vmul.f32 %v505_v33, %v496_v34 }
 0xa48   :  { %509 = vrot.lane.b32.xlu2 %v507_v35, %s1688_s4 }
 0xa50   :  { %298 = vrot.lane.b32.xlu2 %v1861_v7, %s1688_s4 }
 0xaa2   :  { %v510_v39 = vpop.permute.xlu2 %509 }
 0xaa3   :  { %v1929_v40 = vadd.f32 %v510_v39, %v502_v37 }
 0xaa5   :  { %1500 = vtanh.f32 %v1929_v40  ;;  %v571_v33 = vrot.slane %v1929_v40, 6 }
 0xaaa   :  { %v299_v41 = vpop.permute.xlu2 %298 }
 0xaab   :  { %v1501_v42 = vpop.eup %1500  ;;  %302 = vst.msk [vmem:[#allocation3] sm:$0xc] %vm301_vm9, %v299_v41 }
 0xaac   :  { %515 = vrot.lane.b32.xlu0 %v1501_v42, %s1687_s0 }
 0xab4   :  { %373 = vrot.lane.b32.xlu0 %v1870_v38, %s1688_s4  ;;  %v1946_v38 = vld [vmem:[#allocation6 + $0x18] sm:$0xff] }
 0xab5   :  { %804 = vmatpush.msra.mxu3 %v1946_v38  ;;  %867 = vmatpush.msra.mxu0 %v1946_v38 }
 0xab6   :  { %937 = vmatpush.msrb.mxu1 %v1946_v38  ;;  %1213 = vmatpush.msrb.mxu2 %v1946_v38 }
 0xab7   :  { %805 = vmatpush.msra.mxu3 %v1949_v47  ;;  %868 = vmatpush.msra.mxu0 %v1949_v47 }
 0xab8   :  { %938 = vmatpush.msrb.mxu1 %v1949_v47  ;;  %1214 = vmatpush.msrb.mxu2 %v1949_v47 }
 0xab9   :  { %806 = vmatpush.msra.mxu3 %v1954_v49  ;;  %869 = vmatpush.msra.mxu0 %v1954_v49 }
 0xaba   :  { %939 = vmatpush.msrb.mxu1 %v1954_v49  ;;  %1215 = vmatpush.msrb.mxu2 %v1954_v49 }
 0xabb   :  { %807 = vmatpush.msra.mxu3 %v1967_v51  ;;  %870 = vmatpush.msra.mxu0 %v1967_v51 }
 0xabc   :  { %940 = vmatpush.msrb.mxu1 %v1967_v51  ;;  %1216 = vmatpush.msrb.mxu2 %v1967_v51 }
 0xb1e   :  { %v516_v43 = vpop.permute.xlu0 %515 }
 0xb1f   :  { %v518_v7 = vmul.f32 %v516_v43, %v496_v34 }
 0xb21   :  { %520 = vrot.lane.b32.xlu1 %v518_v7, %s1688_s4 }
 0xb26   :  { %v374_v44 = vpop.permute.xlu0 %373 }
 0xb27   :  { %377 = vst.msk [vmem:[#allocation3] sm:$0x30] %vm376_vm10, %v374_v44 }
 0xb29   :  { %448 = vrot.lane.b32.xlu1 %v1882_v1, %s1688_s4 }
 0xb93   :  { %v521_v52 = vpop.permute.xlu1 %520 }
 0xb94   :  { %523 = vst.msk [vmem:[#allocation3 + $0x8] sm:$0x3] %vm229_vm6, %v521_v52  ;;  %1426 = vmatmul.msk.f32.vlgmr.msrb.gmra.mxu3 %vm134_vm1, %v521_v52 }
 0xb95   :  { %1007 = vmatpush.msrb.mxu3 %v1946_v38 }
 0xb97   :  { %1008 = vmatpush.msrb.mxu3 %v1949_v47 }
 0xb99   :  { %1009 = vmatpush.msrb.mxu3 %v1954_v49 }
 0xb9b   :  { %v449_v53 = vpop.permute.xlu1 %448  ;;  %1010 = vmatpush.msrb.mxu3 %v1967_v51 }
 0xb9c   :  { %452 = vst.msk [vmem:[#allocation3] sm:$0xc0] %vm451_vm11, %v449_v53  ;;  %808 = vmatmul.f32.vlgmr.msra.gmra.mxu3 %v1686_v16  ;;  %v1994_v16 = vld [vmem:[%s2130_s7] ss:$0 sm:$0xff]  ;;  %s1689_s7 = smov 96  }
 0xb9d   :  { %1283 = vmatpush.msra.mxu3 %v1946_v38 }
 0xb9f   :  { %1284 = vmatpush.msra.mxu3 %v1949_v47 }
 0xba1   :  { %1285 = vmatpush.msra.mxu3 %v1954_v49 }
 0xba3   :  { %v749_v54 = vld [vmem:[#allocation3] sm:$0xff]  ;;  %1286 = vmatpush.msra.mxu3 %v1967_v51 }
 0xba4   :  { %1432 = vmatmul.msk.f32.vlgmr.msra.gmra.mxu2 %vm134_vm1, %v749_v54 }
 0xc17   :  { %v543_v21 = vpop.f32.mrf.mxu3 }
 0xc18   :  { %v547_v55 = vrot.slane %v543_v21, 6 }
 0xc1a   :  { %v549_v56 = vadd.f32 %v547_v55, %v1921_v15 }
 0xc1c   :  { %1502 = vtanh.f32 %v549_v56  ;;  %v1427_v63 = vmul.f32 -1.442695, %v549_v56 }
 0xc1f   :  { %v809_v59 = vpop.f32.mrf.mxu3 }
 0xc22   :  { %v1503_v57 = vpop.eup %1502 }
 0xc23   :  { %575 = vrot.lane.b32.xlu2 %v1503_v57, %s1687_s0 }
 0xc27   :  { %v786_v58 = vpop.f32.mrf.mxu2 }
 0xc28   :  { %v1997_v60 = vadd.f32 %v1994_v16, %v786_v58 }
 0xc2a   :  { %v812_v61 = vadd.f32 %v809_v59, %v1997_v60 }
 0xc2c   :  { %1504 = vtanh.f32 %v812_v61  ;;  %v1434_v9 = vmul.f32 -1.442695, %v812_v61 }
 0xc2d   :  { %1506 = vpow2.f32 %v1427_v63 }
 0xc32   :  { %v1505_v62 = vpop.eup %1504 }
 0xc33   :  { %835 = vrot.lane.b32.xlu0 %v1505_v62, %s1687_s0  ;;  %v1507_v0 = vpop.eup %1506 }
 0xc34   :  { %v553_v1 = vadd.f32 1.0, %v1507_v0 }
 0xc36   :  { %1508 = vrcp.f32 %v553_v1  ;;  %v565_v8 = vand.u32 2147483648, %v553_v1  ;;  %vm559_vm12 = vweird.f32 %v553_v1  ;;  %v563_v10 = vand.u32 2147483647, %v553_v1 }
 0xc37   :  { %1510 = vpow2.f32 %v1434_v9 }
 0xc38   :  { %v566_v12 = vor.u32 1.1754944e-38, %v565_v8  ;;  %vm564_vm14 = vcmp.eq.f32.partialorder %v563_v10, 8.507059e+37 }
 0xc3c   :  { %v1509_v2 = vpop.eup %1508 }
 0xc3d   :  { %v555_v3 = vmul.f32 %v1509_v2, %v553_v1  ;;  %vm560_vm6 = vweird.f32 %v1509_v2  ;;  %v1511_v19 = vpop.eup %1510 }
 0xc3e   :  { %vm561_vm13 = vmor %vm559_vm12, %vm560_vm6  ;;  %v816_v20 = vadd.f32 1.0, %v1511_v19 }
 0xc3f   :  { %v556_v4 = vsub.f32 1.0, %v555_v3 }
 0xc40   :  { %1512 = vrcp.f32 %v816_v20  ;;  %v828_v27 = vand.u32 2147483648, %v816_v20  ;;  %vm822_vm2 = vweird.f32 %v816_v20  ;;  %v826_v28 = vand.u32 2147483647, %v816_v20 }
 0xc41   :  { %v557_v5 = vmul.f32 %v1509_v2, %v556_v4 }
 0xc42   :  { %v829_v18 = vor.u32 1.1754944e-38, %v828_v27  ;;  %vm827_vm4 = vcmp.eq.f32.partialorder %v826_v28, 8.507059e+37 }
 0xc43   :  { %v558_v6 = vadd.f32 %v1509_v2, %v557_v5 }
 0xc45   :  { %v562_v11 = vsel %vm561_vm13, %v1509_v2, %v558_v6 }
 0xc46   :  { %v567_v14 = vsel %vm564_vm14, %v566_v12, %v562_v11  ;;  %v1513_v22 = vpop.eup %1512 }
 0xc47   :  { %v818_v23 = vmul.f32 %v1513_v22, %v816_v20  ;;  %vm823_vm15 = vweird.f32 %v1513_v22  ;;  %v573_v34 = vmul.f32 %v571_v33, %v567_v14 }
 0xc48   :  { %vm824_vm3 = vmor %vm822_vm2, %vm823_vm15 }
 0xc49   :  { %v819_v24 = vsub.f32 1.0, %v818_v23 }
 0xc4b   :  { %v820_v25 = vmul.f32 %v1513_v22, %v819_v24 }
 0xc4d   :  { %v821_v26 = vadd.f32 %v1513_v22, %v820_v25 }
 0xc4f   :  { %v825_v29 = vsel %vm824_vm3, %v1513_v22, %v821_v26 }
 0xc50   :  { %v830_v31 = vsel %vm827_vm4, %v829_v18, %v825_v29 }
 0xc51   :  { %v833_v39 = vmul.f32 0.0, %v830_v31 }
 0xc7d   :  { %v576_v13 = vpop.permute.xlu2 %575 }
 0xc7e   :  { %v578_v17 = vmul.f32 %v576_v13, %v567_v14 }
 0xc80   :  { %580 = vrot.lane.b32.xlu1 %v578_v17, %s1688_s4 }
 0xca5   :  { %v836_v30 = vpop.permute.xlu0 %835 }
 0xca6   :  { %v838_v32 = vmul.f32 %v836_v30, %v830_v31 }
 0xca8   :  { %840 = vrot.lane.b32.xlu2 %v838_v32, %s1688_s4 }
 0xcf2   :  { %v581_v35 = vpop.permute.xlu1 %580 }
 0xcf3   :  { %v2004_v36 = vadd.f32 %v581_v35, %v573_v34 }
 0xcf5   :  { %1514 = vtanh.f32 %v2004_v36  ;;  %v645_v30 = vrot.slane %v2004_v36, 6 }
 0xcfb   :  { %v1515_v37 = vpop.eup %1514 }
 0xcfc   :  { %586 = vrot.lane.b32.xlu0 %v1515_v37, %s1687_s0 }
 0xd02   :  { %v841_v41 = vpop.permute.xlu2 %840 }
 0xd03   :  { %v2008_v42 = vadd.f32 %v841_v41, %v833_v39 }
 0xd05   :  { %1516 = vtanh.f32 %v2008_v42  ;;  %v900_v35 = vrot.slane %v2008_v42, 6 }
 0xd0b   :  { %v1517_v43 = vpop.eup %1516 }
 0xd0c   :  { %846 = vrot.lane.b32.xlu1 %v1517_v43, %s1687_s0 }
 0xd6e   :  { %v587_v7 = vpop.permute.xlu0 %586 }
 0xd6f   :  { %v2012_v40 = vmul.f32 %v587_v7, %v567_v14 }
 0xd71   :  { %v595_v44 = vrot.slane %v2012_v40, 2 }
 0xd73   :  { %596 = vrot.lane.b32.xlu2 %v595_v44, %s1688_s4 }
 0xd7e   :  { %v847_v45 = vpop.permute.xlu1 %846 }
 0xd7f   :  { %v849_v46 = vmul.f32 %v847_v45, %v830_v31 }
 0xd81   :  { %851 = vrot.lane.b32.xlu0 %v849_v46, %s1688_s4 }
 0xdcd   :  { %v597_v48 = vpop.permute.xlu2 %596 }
 0xdce   :  { %1428 = vmatmul.msk.f32.vlgmr.msrb.gmra.mxu0 %vm134_vm1, %v597_v48 }
 0xdcf   :  { %1077 = vmatpush.msrb.mxu0 %v1946_v38 }
 0xdd1   :  { %1078 = vmatpush.msrb.mxu0 %v1949_v47 }
 0xdd3   :  { %1079 = vmatpush.msrb.mxu0 %v1954_v49 }
 0xdd5   :  { %1080 = vmatpush.msrb.mxu0 %v1967_v51 }
 0xdf3   :  { %v852_v50 = vpop.permute.xlu0 %851 }
 0xdf4   :  { %1435 = vmatmul.msk.f32.vlgmr.msra.gmra.mxu0 %vm134_vm1, %v852_v50 }
 0xe4b   :  { %v617_v52 = vpop.f32.mrf.mxu0 }
 0xe4c   :  { %v621_v53 = vrot.slane %v617_v52, 4 }
 0xe4e   :  { %v623_v54 = vadd.f32 %v621_v53, %v1921_v15 }
 0xe50   :  { %1518 = vtanh.f32 %v623_v54  ;;  %v1429_v59 = vmul.f32 -1.442695, %v623_v54 }
 0xe56   :  { %v1519_v21 = vpop.eup %1518 }
 0xe57   :  { %649 = vrot.lane.b32.xlu1 %v1519_v21, %s1687_s0 }
 0xe71   :  { %v872_v55 = vpop.f32.mrf.mxu0 }
 0xe72   :  { %v876_v56 = vrot.slane %v872_v55, 6 }
 0xe74   :  { %v878_v57 = vadd.f32 %v876_v56, %v1997_v60 }
 0xe76   :  { %1520 = vtanh.f32 %v878_v57  ;;  %v1436_v63 = vmul.f32 -1.442695, %v878_v57 }
 0xe77   :  { %1522 = vpow2.f32 %v1429_v59 }
 0xe7c   :  { %v1521_v58 = vpop.eup %1520 }
 0xe7d   :  { %904 = vrot.lane.b32.xlu2 %v1521_v58, %s1687_s0  ;;  %v1523_v61 = vpop.eup %1522 }
 0xe7e   :  { %v627_v62 = vadd.f32 1.0, %v1523_v61 }
 0xe80   :  { %1524 = vrcp.f32 %v627_v62  ;;  %v639_v9 = vand.u32 2147483648, %v627_v62  ;;  %vm633_vm5 = vweird.f32 %v627_v62  ;;  %v637_v10 = vand.u32 2147483647, %v627_v62 }
 0xe81   :  { %1526 = vpow2.f32 %v1436_v63 }
 0xe82   :  { %v640_v13 = vor.u32 1.1754944e-38, %v639_v9  ;;  %vm638_vm8 = vcmp.eq.f32.partialorder %v637_v10, 8.507059e+37 }
 0xe86   :  { %v1525_v0 = vpop.eup %1524 }
 0xe87   :  { %v1527_v1 = vpop.eup %1526  ;;  %v629_v2 = vmul.f32 %v1525_v0, %v627_v62  ;;  %vm634_vm0 = vweird.f32 %v1525_v0 }
 0xe88   :  { %v882_v3 = vadd.f32 1.0, %v1527_v1  ;;  %vm635_vm7 = vmor %vm633_vm5, %vm634_vm0 }
 0xe89   :  { %v630_v4 = vsub.f32 1.0, %v629_v2 }
 0xe8a   :  { %1528 = vrcp.f32 %v882_v3  ;;  %v894_v24 = vand.u32 2147483648, %v882_v3  ;;  %vm888_vm12 = vweird.f32 %v882_v3  ;;  %v892_v25 = vand.u32 2147483647, %v882_v3 }
 0xe8b   :  { %v631_v5 = vmul.f32 %v1525_v0, %v630_v4 }
 0xe8c   :  { %v895_v27 = vor.u32 1.1754944e-38, %v894_v24  ;;  %vm893_vm14 = vcmp.eq.f32.partialorder %v892_v25, 8.507059e+37 }
 0xe8d   :  { %v632_v8 = vadd.f32 %v1525_v0, %v631_v5 }
 0xe8f   :  { %v636_v12 = vsel %vm635_vm7, %v1525_v0, %v632_v8 }
 0xe90   :  { %v1529_v6 = vpop.eup %1528  ;;  %v641_v17 = vsel %vm638_vm8, %v640_v13, %v636_v12 }
 0xe91   :  { %v884_v11 = vmul.f32 %v1529_v6, %v882_v3  ;;  %vm889_vm6 = vweird.f32 %v1529_v6  ;;  %v647_v31 = vmul.f32 %v645_v30, %v641_v17 }
 0xe92   :  { %vm890_vm13 = vmor %vm888_vm12, %vm889_vm6 }
 0xe93   :  { %v885_v14 = vsub.f32 1.0, %v884_v11 }
 0xe95   :  { %v886_v22 = vmul.f32 %v1529_v6, %v885_v14 }
 0xe97   :  { %v887_v23 = vadd.f32 %v1529_v6, %v886_v22 }
 0xe99   :  { %v891_v26 = vsel %vm890_vm13, %v1529_v6, %v887_v23 }
 0xe9a   :  { %v896_v29 = vsel %vm893_vm14, %v895_v27, %v891_v26 }
 0xe9b   :  { %v902_v37 = vmul.f32 %v900_v35, %v896_v29 }
 0xec9   :  { %v650_v19 = vpop.permute.xlu1 %649 }
 0xeca   :  { %v652_v20 = vmul.f32 %v650_v19, %v641_v17 }
 0xecc   :  { %654 = vrot.lane.b32.xlu0 %v652_v20, %s1688_s4 }
 0xed7   :  { %v905_v28 = vpop.permute.xlu2 %904 }
 0xed8   :  { %v907_v18 = vmul.f32 %v905_v28, %v896_v29 }
 0xeda   :  { %909 = vrot.lane.b32.xlu1 %v907_v18, %s1688_s4 }
 0xf3e   :  { %v655_v32 = vpop.permute.xlu0 %654 }
 0xf3f   :  { %v2030_v33 = vadd.f32 %v655_v32, %v647_v31 }
 0xf41   :  { %1530 = vtanh.f32 %v2030_v33 }
 0xf47   :  { %v1531_v34 = vpop.eup %1530 }
 0xf48   :  { %660 = vrot.lane.b32.xlu2 %v1531_v34, %s1687_s0 }
 0xf4c   :  { %v910_v39 = vpop.permute.xlu1 %909 }
 0xf4d   :  { %v912_v41 = vadd.f32 %v910_v39, %v902_v37 }
 0xf4f   :  { %1532 = vtanh.f32 %v912_v41  ;;  %v970_v8 = vrot.slane %v912_v41, 6  ;;  %v719_v41 = vrot.slane %v2030_v33, 6 }
 0xf55   :  { %v1533_v43 = vpop.eup %1532 }
 0xf56   :  { %915 = vrot.lane.b32.xlu0 %v1533_v43, %s1687_s0 }
 0xfa2   :  { %v661_v7 = vpop.permute.xlu2 %660 }
 0xfa3   :  { %v2036_v36 = vmul.f32 %v661_v7, %v641_v17 }
 0xfa5   :  { %v669_v44 = vrot.slane %v2036_v36, 4 }
 0xfa7   :  { %670 = vrot.lane.b32.xlu1 %v669_v44, %s1688_s4 }
 0xfc8   :  { %v916_v45 = vpop.permute.xlu0 %915 }
 0xfc9   :  { %v918_v46 = vmul.f32 %v916_v45, %v896_v29 }
 0xfcb   :  { %v920_v48 = vrot.slane %v918_v46, 2 }
 0xfcd   :  { %921 = vrot.lane.b32.xlu2 %v920_v48, %s1688_s4 }
0x1019   :  { %v671_v42 = vpop.permute.xlu1 %670 }
0x101a   :  { %1430 = vmatmul.msk.f32.vlgmr.msra.gmra.mxu1 %vm134_vm1, %v671_v42 }
0x101b   :  { %1143 = vmatpush.msra.mxu1 %v1946_v38 }
0x101d   :  { %1144 = vmatpush.msra.mxu1 %v1949_v47 }
0x101f   :  { %1145 = vmatpush.msra.mxu1 %v1954_v49 }
0x1021   :  { %1146 = vmatpush.msra.mxu1 %v1967_v51 }
0x1027   :  { %v922_v50 = vpop.permute.xlu2 %921 }
0x1028   :  { %1437 = vmatmul.msk.f32.vlgmr.msrb.gmra.mxu1 %vm134_vm1, %v922_v50 }
0x1097   :  { %v691_v52 = vpop.f32.mrf.mxu1 }
0x1098   :  { %v695_v63 = vrot.slane %v691_v52, 2 }
0x109a   :  { %v697_v2 = vadd.f32 %v695_v63, %v1921_v15 }
0x109c   :  { %v1431_v15 = vmul.f32 -1.442695, %v697_v2 }
0x10a5   :  { %v942_v53 = vpop.f32.mrf.mxu1 }
0x10a6   :  { %v946_v54 = vrot.slane %v942_v53, 4 }
0x10a8   :  { %v948_v21 = vadd.f32 %v946_v54, %v1997_v60 }
0x10aa   :  { %1534 = vtanh.f32 %v948_v21  ;;  %v1438_v56 = vmul.f32 -1.442695, %v948_v21 }
0x10ac   :  { %1536 = vpow2.f32 %v1438_v56 }
0x10b0   :  { %v1535_v55 = vpop.eup %1534 }
0x10b1   :  { %974 = vrot.lane.b32.xlu0 %v1535_v55, %s1687_s0 }
0x10b2   :  { %v1537_v38 = vpop.eup %1536 }
0x10b3   :  { %v952_v47 = vadd.f32 1.0, %v1537_v38 }
0x10b5   :  { %1538 = vrcp.f32 %v952_v47  ;;  %v964_v61 = vand.u32 2147483648, %v952_v47  ;;  %vm958_vm2 = vweird.f32 %v952_v47  ;;  %v962_v62 = vand.u32 2147483647, %v952_v47 }
0x10b6   :  { %1540 = vtanh.f32 %v697_v2 }
0x10b7   :  { %v965_v1 = vor.u32 1.1754944e-38, %v964_v61  ;;  %vm963_vm4 = vcmp.eq.f32.partialorder %v962_v62, 8.507059e+37 }
0x10bb   :  { %v1539_v49 = vpop.eup %1538 }
0x10bc   :  { %v954_v57 = vmul.f32 %v1539_v49, %v952_v47  ;;  %vm959_vm15 = vweird.f32 %v1539_v49  ;;  %v1541_v6 = vpop.eup %1540 }
0x10bd   :  { %vm960_vm3 = vmor %vm958_vm2, %vm959_vm15 }
0x10be   :  { %v955_v51 = vsub.f32 1.0, %v954_v57 }
0x10c0   :  { %v956_v58 = vmul.f32 %v1539_v49, %v955_v51 }
0x10c2   :  { %v957_v59 = vadd.f32 %v1539_v49, %v956_v58 }
0x10c4   :  { %v961_v0 = vsel %vm960_vm3, %v1539_v49, %v957_v59 }
0x10c5   :  { %v966_v4 = vsel %vm963_vm4, %v965_v1, %v961_v0 }
0x10c6   :  { %v972_v9 = vmul.f32 %v970_v8, %v966_v4 }
0x1123   :  { %v975_v3 = vpop.permute.xlu0 %974 }
0x1124   :  { %v977_v5 = vmul.f32 %v975_v3, %v966_v4 }
0x1126   :  { %979 = vrot.lane.b32.xlu1 %v977_v5, %s1688_s4 }
0x112e   :  { %723 = vrot.lane.b32.xlu1 %v1541_v6, %s1687_s0 }
0x1198   :  { %v980_v10 = vpop.permute.xlu1 %979 }
0x1199   :  { %v2052_v11 = vadd.f32 %v980_v10, %v972_v9 }
0x119b   :  { %1542 = vtanh.f32 %v2052_v11  ;;  %v1040_v58 = vrot.slane %v2052_v11, 6 }
0x119c   :  { %1544 = vpow2.f32 %v1431_v15 }
0x11a0   :  { %v724_v18 = vpop.permute.xlu1 %723 }
0x11a1   :  { %v1543_v12 = vpop.eup %1542 }
0x11a2   :  { %985 = vrot.lane.b32.xlu2 %v1543_v12, %s1687_s0  ;;  %v1545_v13 = vpop.eup %1544 }
0x11a3   :  { %v701_v14 = vadd.f32 1.0, %v1545_v13 }
0x11a5   :  { %1546 = vrcp.f32 %v701_v14  ;;  %v713_v27 = vand.u32 2147483648, %v701_v14  ;;  %vm707_vm5 = vweird.f32 %v701_v14  ;;  %v711_v28 = vand.u32 2147483647, %v701_v14 }
0x11a7   :  { %v714_v30 = vor.u32 1.1754944e-38, %v713_v27  ;;  %vm712_vm8 = vcmp.eq.f32.partialorder %v711_v28, 8.507059e+37 }
0x11ab   :  { %v1547_v17 = vpop.eup %1546 }
0x11ac   :  { %v703_v19 = vmul.f32 %v1547_v17, %v701_v14  ;;  %vm708_vm0 = vweird.f32 %v1547_v17 }
0x11ad   :  { %vm709_vm7 = vmor %vm707_vm5, %vm708_vm0 }
0x11ae   :  { %v704_v20 = vsub.f32 1.0, %v703_v19 }
0x11b0   :  { %v705_v22 = vmul.f32 %v1547_v17, %v704_v20 }
0x11b2   :  { %v706_v25 = vadd.f32 %v1547_v17, %v705_v22 }
0x11b4   :  { %v710_v29 = vsel %vm709_vm7, %v1547_v17, %v706_v25 }
0x11b5   :  { %v715_v31 = vsel %vm712_vm8, %v714_v30, %v710_v29 }
0x11b6   :  { %v726_v32 = vmul.f32 %v724_v18, %v715_v31  ;;  %v721_v7 = vmul.f32 %v719_v41, %v715_v31 }
0x11fc   :  { %v986_v23 = vpop.permute.xlu2 %985 }
0x11fd   :  { %v988_v24 = vmul.f32 %v986_v23, %v966_v4 }
0x11ff   :  { %v990_v26 = vrot.slane %v988_v24, 4 }
0x1201   :  { %991 = vrot.lane.b32.xlu0 %v990_v26, %s1688_s4 }
0x1209   :  { %728 = vrot.lane.b32.xlu0 %v726_v32, %s1688_s4 }
0x1273   :  { %v992_v34 = vpop.permute.xlu0 %991 }
0x1274   :  { %1439 = vmatmul.msk.f32.vlgmr.msrb.gmra.mxu3 %vm134_vm1, %v992_v34 }
0x127b   :  { %v729_v43 = vpop.permute.xlu0 %728 }
0x127c   :  { %v2061_v44 = vadd.f32 %v729_v43, %v721_v7 }
0x12f7   :  { %v1012_v35 = vpop.f32.mrf.mxu3 }
0x12f8   :  { %v1016_v37 = vrot.slane %v1012_v35, 2 }
0x12fa   :  { %v1018_v39 = vadd.f32 %v1016_v37, %v1997_v60 }
0x12fc   :  { %1548 = vtanh.f32 %v1018_v39  ;;  %v1440_v48 = vmul.f32 -1.442695, %v1018_v39 }
0x12fd   :  { %1550 = vtanh.f32 %v2061_v44 }
0x12fe   :  { %1552 = vpow2.f32 %v1440_v48 }
0x1302   :  { %v1549_v45 = vpop.eup %1548 }
0x1303   :  { %1044 = vrot.lane.b32.xlu2 %v1549_v45, %s1687_s0  ;;  %v1551_v46 = vpop.eup %1550 }
0x1304   :  { %v1553_v60 = vpop.eup %1552 }
0x1305   :  { %v1022_v33 = vadd.f32 1.0, %v1553_v60 }
0x1307   :  { %1554 = vrcp.f32 %v1022_v33  ;;  %v1034_v21 = vand.u32 2147483648, %v1022_v33  ;;  %vm1028_vm12 = vweird.f32 %v1022_v33  ;;  %v1032_v55 = vand.u32 2147483647, %v1022_v33 }
0x1309   :  { %v1035_v38 = vor.u32 1.1754944e-38, %v1034_v21  ;;  %vm1033_vm14 = vcmp.eq.f32.partialorder %v1032_v55, 8.507059e+37 }
0x130b   :  { %734 = vrot.lane.b32.xlu2 %v1551_v46, %s1687_s0 }
0x130d   :  { %v1555_v42 = vpop.eup %1554 }
0x130e   :  { %v1024_v50 = vmul.f32 %v1555_v42, %v1022_v33  ;;  %vm1029_vm6 = vweird.f32 %v1555_v42 }
0x130f   :  { %vm1030_vm13 = vmor %vm1028_vm12, %vm1029_vm6 }
0x1310   :  { %v1025_v52 = vsub.f32 1.0, %v1024_v50 }
0x1312   :  { %v1026_v53 = vmul.f32 %v1555_v42, %v1025_v52 }
0x1313   :  { %665 = vrot.lane.b32.xlu2 %v2036_v36, %s1688_s4 }
0x1314   :  { %v1027_v54 = vadd.f32 %v1555_v42, %v1026_v53 }
0x1316   :  { %v1031_v56 = vsel %vm1030_vm13, %v1555_v42, %v1027_v54 }
0x1317   :  { %v1036_v36 = vsel %vm1033_vm14, %v1035_v38, %v1031_v56 }
0x1318   :  { %v1042_v59 = vmul.f32 %v1040_v58, %v1036_v36 }
0x135d   :  { %v1045_v47 = vpop.permute.xlu2 %1044 }
0x135e   :  { %v1047_v49 = vmul.f32 %v1045_v47, %v1036_v36 }
0x1360   :  { %1049 = vrot.lane.b32.xlu1 %v1047_v49, %s1688_s4 }
0x1365   :  { %v735_v57 = vpop.permute.xlu2 %734 }
0x1366   :  { %v737_v1 = vmul.f32 %v735_v57, %v715_v31 }
0x1368   :  { %591 = vrot.lane.b32.xlu1 %v2012_v40, %s1688_s4 }
0x136d   :  { %v666_v51 = vpop.permute.xlu2 %665 }
0x136e   :  { %668 = vst.msk [vmem:[#allocation3 + $0x8] sm:$0x30] %vm376_vm10, %v666_v51 }
0x13d2   :  { %v1050_v61 = vpop.permute.xlu1 %1049 }
0x13d3   :  { %v1052_v62 = vadd.f32 %v1050_v61, %v1042_v59 }
0x13d5   :  { %1556 = vtanh.f32 %v1052_v62  ;;  %v1107_v18 = vrot.slane %v1052_v62, 6 }
0x13da   :  { %v592_v63 = vpop.permute.xlu1 %591 }
0x13db   :  { %v1557_v0 = vpop.eup %1556  ;;  %594 = vst.msk [vmem:[#allocation3 + $0x8] sm:$0xc] %vm301_vm9, %v592_v63 }
0x13dc   :  { %1055 = vrot.lane.b32.xlu0 %v1557_v0, %s1687_s0 }
0x13e4   :  { %739 = vrot.lane.b32.xlu0 %v737_v1, %s1688_s4 }
0x144e   :  { %v1056_v2 = vpop.permute.xlu0 %1055 }
0x144f   :  { %v1058_v40 = vmul.f32 %v1056_v2, %v1036_v36 }
0x1451   :  { %v1060_v3 = vrot.slane %v1058_v40, 6 }
0x1453   :  { %1061 = vrot.lane.b32.xlu1 %v1060_v3, %s1688_s4 }
0x1456   :  { %v740_v4 = vpop.permute.xlu0 %739 }
0x1457   :  { %742 = vst.msk [vmem:[#allocation3 + $0x8] sm:$0xc0] %vm451_vm11, %v740_v4 }
0x1458   :  { %743 = vst.msk [vmem:[#allocation9 - $0x6] sm:$0xc0] %vm451_vm11, %v740_v4 }
0x145e   :  { %v750_v5 = vld [vmem:[#allocation3 + $0x8] sm:$0xff] }
0x145f   :  { %1433 = vmatmul.msk.f32.gmra.mxu2 %vm134_vm1, %v750_v5 }
0x14c5   :  { %v1062_v6 = vpop.permute.xlu1 %1061 }
0x14c6   :  { %1441 = vmatmul.msk.f32.vlgmr.msrb.gmra.mxu0 %vm134_vm1, %v1062_v6 }
0x14e2   :  { %v789_v8 = vpop.f32.mrf.mxu2 }
0x14e3   :  { %v2082_v9 = vadd.f32 %v1994_v16, %v789_v8 }
0x1543   :  { %v1082_v10 = vpop.f32.mrf.mxu0 }
0x1544   :  { %v1085_v11 = vadd.f32 %v1082_v10, %v2082_v9 }
0x1546   :  { %1558 = vtanh.f32 %v1085_v11  ;;  %v1442_v15 = vmul.f32 -1.442695, %v1085_v11 }
0x1548   :  { %1560 = vpow2.f32 %v1442_v15 }
0x154c   :  { %v1559_v12 = vpop.eup %1558 }
0x154d   :  { %1111 = vrot.lane.b32.xlu2 %v1559_v12, %s1687_s0 }
0x154e   :  { %v1561_v13 = vpop.eup %1560 }
0x154f   :  { %v1089_v14 = vadd.f32 1.0, %v1561_v13 }
0x1551   :  { %1562 = vrcp.f32 %v1089_v14  ;;  %v1101_v16 = vand.u32 2147483648, %v1089_v14  ;;  %vm1095_vm10 = vweird.f32 %v1089_v14  ;;  %v1099_v24 = vand.u32 2147483647, %v1089_v14 }
0x1553   :  { %v1102_v26 = vor.u32 1.1754944e-38, %v1101_v16  ;;  %vm1100_vm2 = vcmp.eq.f32.partialorder %v1099_v24, 8.507059e+37 }
0x1557   :  { %v1563_v17 = vpop.eup %1562 }
0x1558   :  { %v1091_v19 = vmul.f32 %v1563_v17, %v1089_v14  ;;  %vm1096_vm9 = vweird.f32 %v1563_v17 }
0x1559   :  { %vm1097_vm15 = vmor %vm1095_vm10, %vm1096_vm9 }
0x155a   :  { %v1092_v20 = vsub.f32 1.0, %v1091_v19 }
0x155c   :  { %v1093_v22 = vmul.f32 %v1563_v17, %v1092_v20 }
0x155e   :  { %v1094_v23 = vadd.f32 %v1563_v17, %v1093_v22 }
0x1560   :  { %v1098_v25 = vsel %vm1097_vm15, %v1563_v17, %v1094_v23 }
0x1561   :  { %v1103_v28 = vsel %vm1100_vm2, %v1102_v26, %v1098_v25 }
0x1562   :  { %v1109_v30 = vmul.f32 %v1107_v18, %v1103_v28 }
0x15a7   :  { %v1112_v27 = vpop.permute.xlu2 %1111 }
0x15a8   :  { %v1114_v29 = vmul.f32 %v1112_v27, %v1103_v28 }
0x15aa   :  { %1116 = vrot.lane.b32.xlu0 %v1114_v29, %s1688_s4 }
0x161c   :  { %v1117_v31 = vpop.permute.xlu0 %1116 }
0x161d   :  { %v1119_v32 = vadd.f32 %v1117_v31, %v1109_v30 }
0x161f   :  { %1564 = vtanh.f32 %v1119_v32  ;;  %v1176_v49 = vrot.slane %v1119_v32, 6 }
0x1625   :  { %v1565_v34 = vpop.eup %1564 }
0x1626   :  { %1122 = vrot.lane.b32.xlu1 %v1565_v34, %s1687_s0 }
0x1698   :  { %v1123_v35 = vpop.permute.xlu1 %1122 }
0x1699   :  { %v1125_v37 = vmul.f32 %v1123_v35, %v1103_v28 }
0x169b   :  { %1127 = vrot.lane.b32.xlu2 %v1125_v37, %s1688_s4 }
0x16f5   :  { %v1128_v39 = vpop.permute.xlu2 %1127 }
0x16f6   :  { %1443 = vmatmul.msk.f32.vlgmr.msra.gmra.mxu1 %vm134_vm1, %v1128_v39 }
0x1773   :  { %v1148_v41 = vpop.f32.mrf.mxu1 }
0x1774   :  { %v1152_v43 = vrot.slane %v1148_v41, 6 }
0x1776   :  { %v1154_v7 = vadd.f32 %v1152_v43, %v2082_v9 }
0x1778   :  { %1566 = vtanh.f32 %v1154_v7  ;;  %v1444_v46 = vmul.f32 -1.442695, %v1154_v7 }
0x177a   :  { %1568 = vpow2.f32 %v1444_v46 }
0x177e   :  { %v1567_v45 = vpop.eup %1566 }
0x177f   :  { %1180 = vrot.lane.b32.xlu0 %v1567_v45, %s1687_s0 }
0x1780   :  { %v1569_v48 = vpop.eup %1568 }
0x1781   :  { %v1158_v60 = vadd.f32 1.0, %v1569_v48 }
0x1783   :  { %1570 = vrcp.f32 %v1158_v60  ;;  %v1170_v54 = vand.u32 2147483648, %v1158_v60  ;;  %vm1164_vm4 = vweird.f32 %v1158_v60  ;;  %v1168_v21 = vand.u32 2147483647, %v1158_v60 }
0x1785   :  { %v1171_v56 = vor.u32 1.1754944e-38, %v1170_v54  ;;  %vm1169_vm5 = vcmp.eq.f32.partialorder %v1168_v21, 8.507059e+37 }
0x1789   :  { %v1571_v33 = vpop.eup %1570 }
0x178a   :  { %v1160_v42 = vmul.f32 %v1571_v33, %v1158_v60  ;;  %vm1165_vm3 = vweird.f32 %v1571_v33 }
0x178b   :  { %vm1166_vm0 = vmor %vm1164_vm4, %vm1165_vm3 }
0x178c   :  { %v1161_v50 = vsub.f32 1.0, %v1160_v42 }
0x178e   :  { %v1162_v52 = vmul.f32 %v1571_v33, %v1161_v50 }
0x1790   :  { %v1163_v53 = vadd.f32 %v1571_v33, %v1162_v52 }
0x1792   :  { %v1167_v55 = vsel %vm1166_vm0, %v1571_v33, %v1163_v53 }
0x1793   :  { %v1172_v47 = vsel %vm1169_vm5, %v1171_v56, %v1167_v55 }
0x1794   :  { %v1178_v57 = vmul.f32 %v1176_v49, %v1172_v47 }
0x17f1   :  { %v1181_v38 = vpop.permute.xlu0 %1180 }
0x17f2   :  { %v1183_v36 = vmul.f32 %v1181_v38, %v1172_v47 }
0x17f4   :  { %1185 = vrot.lane.b32.xlu1 %v1183_v36, %s1688_s4 }
0x1866   :  { %v1186_v51 = vpop.permute.xlu1 %1185 }
0x1867   :  { %v1188_v58 = vadd.f32 %v1186_v51, %v1178_v57 }
0x1869   :  { %1572 = vtanh.f32 %v1188_v58  ;;  %v1246_v16 = vrot.slane %v1188_v58, 6 }
0x186f   :  { %v1573_v59 = vpop.eup %1572 }
0x1870   :  { %1191 = vrot.lane.b32.xlu2 %v1573_v59, %s1687_s0 }
0x18ca   :  { %v1192_v61 = vpop.permute.xlu2 %1191 }
0x18cb   :  { %v1194_v62 = vmul.f32 %v1192_v61, %v1172_v47 }
0x18cd   :  { %v1196_v63 = vrot.slane %v1194_v62, 2 }
0x18cf   :  { %1197 = vrot.lane.b32.xlu0 %v1196_v63, %s1688_s4 }
0x1941   :  { %v1198_v0 = vpop.permute.xlu0 %1197 }
0x1942   :  { %1445 = vmatmul.msk.f32.vlgmr.msrb.gmra.mxu2 %vm134_vm1, %v1198_v0 }
0x19c5   :  { %v1218_v1 = vpop.f32.mrf.mxu2 }
0x19c6   :  { %v1222_v2 = vrot.slane %v1218_v1, 4 }
0x19c8   :  { %v1224_v40 = vadd.f32 %v1222_v2, %v2082_v9 }
0x19ca   :  { %1574 = vtanh.f32 %v1224_v40  ;;  %v1446_v4 = vmul.f32 -1.442695, %v1224_v40 }
0x19cc   :  { %1576 = vpow2.f32 %v1446_v4 }
0x19d0   :  { %v1575_v3 = vpop.eup %1574 }
0x19d1   :  { %1250 = vrot.lane.b32.xlu1 %v1575_v3, %s1687_s0 }
0x19d2   :  { %v1577_v5 = vpop.eup %1576 }
0x19d3   :  { %v1228_v6 = vadd.f32 1.0, %v1577_v5 }
0x19d5   :  { %1578 = vrcp.f32 %v1228_v6  ;;  %v1240_v13 = vand.u32 2147483648, %v1228_v6  ;;  %vm1234_vm8 = vweird.f32 %v1228_v6  ;;  %v1238_v14 = vand.u32 2147483647, %v1228_v6 }
0x19d7   :  { %v1241_v19 = vor.u32 1.1754944e-38, %v1240_v13  ;;  %vm1239_vm12 = vcmp.eq.f32.partialorder %v1238_v14, 8.507059e+37 }
0x19db   :  { %v1579_v8 = vpop.eup %1578 }
0x19dc   :  { %v1230_v10 = vmul.f32 %v1579_v8, %v1228_v6  ;;  %vm1235_vm7 = vweird.f32 %v1579_v8 }
0x19dd   :  { %vm1236_vm6 = vmor %vm1234_vm8, %vm1235_vm7 }
0x19de   :  { %v1231_v11 = vsub.f32 1.0, %v1230_v10 }
0x19e0   :  { %v1232_v12 = vmul.f32 %v1579_v8, %v1231_v11 }
0x19e2   :  { %v1233_v15 = vadd.f32 %v1579_v8, %v1232_v12 }
0x19e4   :  { %v1237_v17 = vsel %vm1236_vm6, %v1579_v8, %v1233_v15 }
0x19e5   :  { %v1242_v22 = vsel %vm1239_vm12, %v1241_v19, %v1237_v17 }
0x19e6   :  { %v1248_v24 = vmul.f32 %v1246_v16, %v1242_v22 }
0x1a43   :  { %v1251_v20 = vpop.permute.xlu1 %1250 }
0x1a44   :  { %v1253_v23 = vmul.f32 %v1251_v20, %v1242_v22 }
0x1a46   :  { %1255 = vrot.lane.b32.xlu2 %v1253_v23, %s1688_s4 }
0x1aa0   :  { %v1256_v25 = vpop.permute.xlu2 %1255 }
0x1aa1   :  { %v1258_v26 = vadd.f32 %v1256_v25, %v1248_v24 }
0x1aa3   :  { %1580 = vtanh.f32 %v1258_v26  ;;  %v1316_v54 = vrot.slane %v1258_v26, 6 }
0x1aa9   :  { %v1581_v27 = vpop.eup %1580 }
0x1aaa   :  { %1261 = vrot.lane.b32.xlu0 %v1581_v27, %s1687_s0 }
0x1b1c   :  { %v1262_v28 = vpop.permute.xlu0 %1261 }
0x1b1d   :  { %v1264_v29 = vmul.f32 %v1262_v28, %v1242_v22 }
0x1b1f   :  { %v1266_v18 = vrot.slane %v1264_v29, 4 }
0x1b21   :  { %1267 = vrot.lane.b32.xlu1 %v1266_v18, %s1688_s4 }
0x1b93   :  { %v1268_v30 = vpop.permute.xlu1 %1267 }
0x1b94   :  { %1447 = vmatmul.msk.f32.vlgmr.msra.gmra.mxu3 %vm134_vm1, %v1268_v30 }
0x1c17   :  { %v1288_v31 = vpop.f32.mrf.mxu3 }
0x1c18   :  { %v1292_v32 = vrot.slane %v1288_v31, 2 }
0x1c1a   :  { %v1294_v34 = vadd.f32 %v1292_v32, %v2082_v9 }
0x1c1c   :  { %1582 = vtanh.f32 %v1294_v34  ;;  %v1448_v37 = vmul.f32 -1.442695, %v1294_v34 }
0x1c1e   :  { %1584 = vpow2.f32 %v1448_v37 }
0x1c22   :  { %v1583_v35 = vpop.eup %1582 }
0x1c23   :  { %1320 = vrot.lane.b32.xlu2 %v1583_v35, %s1687_s0 }
0x1c24   :  { %v1585_v39 = vpop.eup %1584 }
0x1c25   :  { %v1298_v41 = vadd.f32 1.0, %v1585_v39 }
0x1c27   :  { %1586 = vrcp.f32 %v1298_v41  ;;  %v1310_v9 = vand.u32 2147483648, %v1298_v41  ;;  %vm1304_vm13 = vweird.f32 %v1298_v41  ;;  %v1308_v60 = vand.u32 2147483647, %v1298_v41 }
0x1c29   :  { %v1311_v42 = vor.u32 1.1754944e-38, %v1310_v9  ;;  %vm1309_vm9 = vcmp.eq.f32.partialorder %v1308_v60, 8.507059e+37 }
0x1c2b   :  { %745 = vrot.lane.b32.xlu2 %v2061_v44, %s1689_s7 }
0x1c2d   :  { %v1587_v43 = vpop.eup %1586 }
0x1c2e   :  { %v1300_v7 = vmul.f32 %v1587_v43, %v1298_v41  ;;  %vm1305_vm1 = vweird.f32 %v1587_v43 }
0x1c2f   :  { %vm1306_vm14 = vmor %vm1304_vm13, %vm1305_vm1 }
0x1c30   :  { %v1301_v45 = vsub.f32 1.0, %v1300_v7 }
0x1c32   :  { %v1302_v46 = vmul.f32 %v1587_v43, %v1301_v45 }
0x1c34   :  { %v1303_v48 = vadd.f32 %v1587_v43, %v1302_v46 }
0x1c36   :  { %v1307_v33 = vsel %vm1306_vm14, %v1587_v43, %v1303_v48 }
0x1c37   :  { %v1312_v44 = vsel %vm1309_vm9, %v1311_v42, %v1307_v33 }
0x1c38   :  { %v1318_v21 = vmul.f32 %v1316_v54, %v1312_v44 }
0x1c7d   :  { %v1321_v50 = vpop.permute.xlu2 %1320 }
0x1c7e   :  { %v1323_v52 = vmul.f32 %v1321_v50, %v1312_v44 }
0x1c80   :  { %1325 = vrot.lane.b32.xlu0 %v1323_v52, %s1688_s4 }
0x1c85   :  { %v746_v53 = vpop.permute.xlu2 %745 }
0x1c86   :  { %748 = vst.msk [vmem:[#allocation10 - $0x6] sm:$0xc0] %vm451_vm11, %v746_v53 }
0x1cf2   :  { %v1326_v55 = vpop.permute.xlu0 %1325 }
0x1cf3   :  { %v1328_v56 = vadd.f32 %v1326_v55, %v1318_v21 }
0x1cf5   :  { %1588 = vtanh.f32 %v1328_v56 }
0x1cfb   :  { %v1589_v38 = vpop.eup %1588 }
0x1cfc   :  { %1331 = vrot.lane.b32.xlu1 %v1589_v38, %s1687_s0  ;;  %s1692_s0 = smov [#allocation9]  }
0x1cfd   :  { %s1351_s24 = sshll.u32 %s1692_s0, 4  ;;  %s1352_s24 = int_to_ptr.vmem [resolvable:$true] %s1351_s24 }
0x1d04   :  { %1342 = vrot.lane.b32.xlu1 %v1328_v56, %s1689_s7 }
0x1d6e   :  { %v1332_v47 = vpop.permute.xlu1 %1331 }
0x1d6f   :  { %v1334_v36 = vmul.f32 %v1332_v47, %v1312_v44 }
0x1d71   :  { %1336 = vrot.lane.b32.xlu0 %v1334_v36, %s1688_s4 }
0x1d76   :  { %v1343_v49 = vpop.permute.xlu1 %1342 }
0x1d77   :  { %1346 = vst.msk [vmem:[#allocation10 - $0x4] sm:$0xc0] %vm451_vm11, %v1343_v49 }
0x1d78   :  { %1372 = dma.vmem_to_hbm [thread:$0]  %s1365_s18, 64, %s1367_s25, [#allocation11], %s1688_s4, %s1688_s4, %s1691_s6  }
0x1de3   :  { %v1337_v57 = vpop.permute.xlu0 %1336 }
0x1de4   :  { %1340 = vst.msk [vmem:[#allocation9 - $0x4] sm:$0xc0] %vm451_vm11, %v1337_v57 }
0x1de5   :  { %1359 = dma.vmem_to_hbm [thread:$0]  %s1352_s24, 64, %s1354_s11, [#allocation8], %s1688_s4, %s1688_s4, %s1691_s6  }
0x1de6   :  { %1678 = dma.done.wait [#allocation8], 64  }
0x1de7   :  { %1679 = vsyncadd [#allocation8], 4294967232 }
0x1de8   :  { %1680 = dma.done.wait [#allocation11], 64  }
0x1de9   :  { %1681 = vsyncadd [#allocation11], 4294967232 }
0x1dea   :  { %1381 = vsyncpa [#allocation7], 1 }
0x1deb   :  { %1382 = vsyncpa [#allocation8], 1 }
0x1dec   :  { %1383 = vsyncpa [#allocation11], 1 }

</bundles_post_ra>
